<compile_context>
chip_gen: v6e
topology: v6e:2x2x1
jax: 0.10.0
libtpu: 0.0.40
codegen_flags: <defaults>
</compile_context>

<pallas_src>
import math

import jax
import jax.numpy as jnp
from jax.experimental import pallas as pl
from jax.experimental.pallas import tpu as pltpu

# ---------------- small, camembert-like synthetic config ----------------
VOCAB = 100
VOCAB_PAD = 128          # embedding table padded to 128 rows -> aligned one-hot contraction
HIDDEN = 64
NUM_HEADS = 2
HEAD_DIM = HIDDEN // NUM_HEADS
INTERMEDIATE = 128
NUM_LAYERS = 2
MAX_POS = 32
NUM_CLASSES = 3
CLS_PAD = 128            # lane-dense padded width for the classifier output
LN_EPS = 1e-5
BATCH = 2
SEQ = 8


# ---------------- in-kernel helpers (pure value math, stays in vregs) ----------------
def _layernorm(h, g, b):
    mu = jnp.mean(h, axis=-1, keepdims=True)
    var = jnp.mean(jnp.square(h - mu), axis=-1, keepdims=True)
    return (h - mu) * jax.lax.rsqrt(var + LN_EPS) * g + b


def _gelu(x):
    # TODO(synk): HF "gelu" is erf-based; tanh approximation used for guaranteed TPU lowering.
    return 0.5 * x * (1.0 + jnp.tanh(0.7978845608028654 * (x + 0.044715 * x * x * x)))


# ---------------- the fused forward kernel ----------------
def _fused_bert_kernel(
    ids_ref, mask_ref,
    wemb_ref, ptemb_ref, elng_ref, elnb_ref,
    wqkv_ref, bqkv_ref, wo_ref, bo_ref, ln1g_ref, ln1b_ref,
    w1_ref, b1_ref, w2_ref, b2_ref, ln2g_ref, ln2b_ref,
    clsw_ref, clsb_ref,
    out_ref,
):
    B, S, H = BATCH, SEQ, HIDDEN
    BS = B * S
    scale = 1.0 / math.sqrt(HEAD_DIM)

    # ---- embeddings: gather via one-hot matmul on the VMEM-resident (padded) table ----
    ids = ids_ref[...]                                               # (BS, 1) int32
    vocab_iota = jax.lax.broadcasted_iota(jnp.int32, (BS, VOCAB_PAD), 1)
    onehot = (vocab_iota == ids).astype(jnp.float32)                 # (BS, VOCAB_PAD)
    we = jnp.dot(onehot, wemb_ref[...], preferred_element_type=jnp.float32)   # (BS, H)
    pt = jnp.concatenate([ptemb_ref[...]] * B, axis=0)               # (BS, H) pos+type emb
    x = _layernorm(we + pt, elng_ref[...], elnb_ref[...])            # (BS, H)

    # BERT extended attention mask: 0 where attended, -1e9 where padded (additive key mask).
    bias = (1.0 - mask_ref[...]) * -1e9                              # (B, S)

    # ---- encoder layers (static unroll; weights resident in VMEM) ----
    for l in range(NUM_LAYERS):
        # fused Q/K/V projection: one MXU pass, one lane-dense (BS, 3H) result
        qkv = jnp.dot(x, wqkv_ref[l], preferred_element_type=jnp.float32) + bqkv_ref[l]

        ctx_rows = []
        for b in range(B):
            r0 = b * S                                               # 8-aligned sublane offset
            bias_b = bias[b:b + 1, :]                                # (1, S) broadcast over rows
            heads = []
            for h in range(NUM_HEADS):
                c0 = h * HEAD_DIM                                    # 32-multiple lane offset
                q_bh = qkv[r0:r0 + S, c0:c0 + HEAD_DIM]              # (S, Dh)
                k_bh = qkv[r0:r0 + S, H + c0:H + c0 + HEAD_DIM]
                v_bh = qkv[r0:r0 + S, 2 * H + c0:2 * H + c0 + HEAD_DIM]
                scores = jax.lax.dot_general(
                    q_bh, k_bh, (((1,), (1,)), ((), ())),
                    preferred_element_type=jnp.float32) * scale      # (S, S)
                scores = scores + bias_b
                p = jnp.exp(scores - jnp.max(scores, axis=-1, keepdims=True))
                p = p * pl.reciprocal(jnp.sum(p, axis=-1, keepdims=True), approx=True)
                heads.append(jnp.dot(p, v_bh, preferred_element_type=jnp.float32))
            ctx_rows.append(jnp.concatenate(heads, axis=-1))         # (S, H)
        ctx = jnp.concatenate(ctx_rows, axis=0)                      # (BS, H)

        attn_out = jnp.dot(ctx, wo_ref[l], preferred_element_type=jnp.float32) + bo_ref[l]
        x = _layernorm(attn_out + x, ln1g_ref[l], ln1b_ref[l])

        h1 = _gelu(jnp.dot(x, w1_ref[l], preferred_element_type=jnp.float32) + b1_ref[l])
        ffn = jnp.dot(h1, w2_ref[l], preferred_element_type=jnp.float32) + b2_ref[l]
        x = _layernorm(ffn + x, ln2g_ref[l], ln2b_ref[l])

    # ---- [CLS] pooling + classifier head (dropout = identity at inference) ----
    cls = jnp.concatenate([x[b * S:b * S + 1, :] for b in range(B)], axis=0)   # (B, H)
    logits = jnp.dot(cls, clsw_ref[...], preferred_element_type=jnp.float32) + clsb_ref[...]
    out_ref[...] = logits.astype(out_ref.dtype)                      # (B, CLS_PAD) lane-dense


def _full_spec(arr):
    """Full-array VMEM block, single grid step."""
    zeros = (0,) * arr.ndim

    def index_map(i):
        return zeros

    return pl.BlockSpec(arr.shape, index_map)


@jax.jit
def bert_classifier_forward(packed, input_ids, attention_mask):
    B, S = input_ids.shape
    ids = input_ids.reshape(B * S, 1).astype(jnp.int32)
    mask = attention_mask.astype(jnp.float32)

    inputs = (
        ids, mask,
        packed["word_emb"], packed["pt_emb"],
        packed["emb_ln_g"], packed["emb_ln_b"],
        packed["wqkv"], packed["bqkv"], packed["wo"], packed["bo"],
        packed["ln1_g"], packed["ln1_b"],
        packed["w1"], packed["b1"], packed["w2"], packed["b2"],
        packed["ln2_g"], packed["ln2_b"],
        packed["cls_w"], packed["cls_b"],
    )

    out = pl.pallas_call(
        _fused_bert_kernel,
        out_shape=jax.ShapeDtypeStruct((B, CLS_PAD), jnp.float32),
        grid=(1,),
        in_specs=[_full_spec(a) for a in inputs],
        out_specs=pl.BlockSpec((B, CLS_PAD), lambda i: (0, 0)),
        compiler_params=pltpu.CompilerParams(dimension_semantics=("arbitrary",)),
    )(*inputs)
    return out[:, :NUM_CLASSES]


# ---------------- deterministic synthetic parameters ----------------
def init_params(key):
    def nrm(k, shape):
        return 0.02 * jax.random.normal(k, shape, jnp.float32)

    keys = jax.random.split(key, 4 + NUM_LAYERS)
    params = {
        "word_emb": nrm(keys[0], (VOCAB, HIDDEN)),
        "pos_emb": nrm(keys[1], (MAX_POS, HIDDEN)),
        "type_emb": nrm(keys[2], (1, HIDDEN)),
        "emb_ln_g": jnp.ones((HIDDEN,), jnp.float32),
        "emb_ln_b": jnp.zeros((HIDDEN,), jnp.float32),
        "cls_w": nrm(keys[3], (HIDDEN, NUM_CLASSES)),
        "cls_b": jnp.zeros((NUM_CLASSES,), jnp.float32),
        "layers": [],
    }
    for li in range(NUM_LAYERS):
        lk = jax.random.split(keys[4 + li], 6)
        params["layers"].append({
            "wq": nrm(lk[0], (HIDDEN, HIDDEN)), "bq": jnp.zeros((HIDDEN,), jnp.float32),
            "wk": nrm(lk[1], (HIDDEN, HIDDEN)), "bk": jnp.zeros((HIDDEN,), jnp.float32),
            "wv": nrm(lk[2], (HIDDEN, HIDDEN)), "bv": jnp.zeros((HIDDEN,), jnp.float32),
            "wo": nrm(lk[3], (HIDDEN, HIDDEN)), "bo": jnp.zeros((HIDDEN,), jnp.float32),
            "ln1_g": jnp.ones((HIDDEN,), jnp.float32), "ln1_b": jnp.zeros((HIDDEN,), jnp.float32),
            "w1": nrm(lk[4], (HIDDEN, INTERMEDIATE)), "b1": jnp.zeros((INTERMEDIATE,), jnp.float32),
            "w2": nrm(lk[5], (INTERMEDIATE, HIDDEN)), "b2": jnp.zeros((HIDDEN,), jnp.float32),
            "ln2_g": jnp.ones((HIDDEN,), jnp.float32), "ln2_b": jnp.zeros((HIDDEN,), jnp.float32),
        })
    return params


def pack_params(params):
    """One-time parameter preprocessing:
       fuse QKV, stack per-layer weights along a leading layer axis, pad the embedding table
       to 128 rows, fold pos+type embeddings, pad the classifier head to 128 lanes."""
    layers = params["layers"]

    def stack(name):
        return jnp.stack([lp[name] for lp in layers])

    def stack_row(name):
        return jnp.stack([lp[name][None, :] for lp in layers])        # (L, 1, N)

    wqkv = jnp.stack([jnp.concatenate([lp["wq"], lp["wk"], lp["wv"]], axis=1) for lp in layers])
    bqkv = jnp.stack([jnp.concatenate([lp["bq"], lp["bk"], lp["bv"]])[None, :] for lp in layers])

    return {
        "word_emb": jnp.pad(params["word_emb"], ((0, VOCAB_PAD - VOCAB), (0, 0))),  # (128, H)
        "pt_emb": params["pos_emb"][:SEQ] + params["type_emb"],       # (S, H) pos+type folded
        "emb_ln_g": params["emb_ln_g"][None, :],                      # (1, H)
        "emb_ln_b": params["emb_ln_b"][None, :],
        "wqkv": wqkv,                                                 # (L, H, 3H)
        "bqkv": bqkv,                                                 # (L, 1, 3H)
        "wo": stack("wo"), "bo": stack_row("bo"),
        "ln1_g": stack_row("ln1_g"), "ln1_b": stack_row("ln1_b"),
        "w1": stack("w1"), "b1": stack_row("b1"),
        "w2": stack("w2"), "b2": stack_row("b2"),
        "ln2_g": stack_row("ln2_g"), "ln2_b": stack_row("ln2_b"),
        "cls_w": jnp.pad(params["cls_w"], ((0, 0), (0, CLS_PAD - NUM_CLASSES))),   # (H, 128)
        "cls_b": jnp.pad(params["cls_b"], (0, CLS_PAD - NUM_CLASSES))[None, :],    # (1, 128)
    }


if __name__ == "__main__":
    root = jax.random.PRNGKey(0)
    k_ids, k_params = jax.random.split(root)

    input_ids = jax.random.randint(k_ids, (BATCH, SEQ), 0, VOCAB, dtype=jnp.int32)
    attention_mask = jnp.ones((BATCH, SEQ), jnp.float32).at[1, 6:].set(0.0)  # pad tail of row 1

    params = init_params(k_params)
    packed = pack_params(params)

    logits = bert_classifier_forward(packed, input_ids, attention_mask)
    jax.block_until_ready(logits)

    assert logits.shape == (BATCH, NUM_CLASSES), logits.shape
    assert bool(jnp.all(jnp.isfinite(logits)))
    print("KERNEL_OK")
</pallas_src>

<mosaic_0001>
module attributes {stable_mosaic.version = 11 : i64} {
  func.func @_fused_bert_kernel(%arg0: i32, %arg1: memref<16x1xi32, #tpu.memory_space<vmem>>, %arg2: memref<2x8xf32, #tpu.memory_space<vmem>>, %arg3: memref<128x64xf32, #tpu.memory_space<vmem>>, %arg4: memref<8x64xf32, #tpu.memory_space<vmem>>, %arg5: memref<1x64xf32, #tpu.memory_space<vmem>>, %arg6: memref<1x64xf32, #tpu.memory_space<vmem>>, %arg7: memref<2x64x192xf32, #tpu.memory_space<vmem>>, %arg8: memref<2x1x192xf32, #tpu.memory_space<vmem>>, %arg9: memref<2x64x64xf32, #tpu.memory_space<vmem>>, %arg10: memref<2x1x64xf32, #tpu.memory_space<vmem>>, %arg11: memref<2x1x64xf32, #tpu.memory_space<vmem>>, %arg12: memref<2x1x64xf32, #tpu.memory_space<vmem>>, %arg13: memref<2x64x128xf32, #tpu.memory_space<vmem>>, %arg14: memref<2x1x128xf32, #tpu.memory_space<vmem>>, %arg15: memref<2x128x64xf32, #tpu.memory_space<vmem>>, %arg16: memref<2x1x64xf32, #tpu.memory_space<vmem>>, %arg17: memref<2x1x64xf32, #tpu.memory_space<vmem>>, %arg18: memref<2x1x64xf32, #tpu.memory_space<vmem>>, %arg19: memref<64x128xf32, #tpu.memory_space<vmem>>, %arg20: memref<1x128xf32, #tpu.memory_space<vmem>>, %arg21: memref<2x128xf32, #tpu.memory_space<vmem>>) attributes {dimension_semantics = [#tpu.dimension_semantics<arbitrary>], iteration_bounds = array<i64: 1>, scalar_prefetch = 0 : i64, scratch_operands = 0 : i64, tpu.core_type = #tpu.core_type<tc>, window_params = [{pipeline_mode = #tpu.pipeline_mode<synchronous>, transform_indices = @transform_0, window_bounds = array<i64: 16, 1>}, {pipeline_mode = #tpu.pipeline_mode<synchronous>, transform_indices = @transform_1, window_bounds = array<i64: 2, 8>}, {pipeline_mode = #tpu.pipeline_mode<synchronous>, transform_indices = @transform_2, window_bounds = array<i64: 128, 64>}, {pipeline_mode = #tpu.pipeline_mode<synchronous>, transform_indices = @transform_3, window_bounds = array<i64: 8, 64>}, {pipeline_mode = #tpu.pipeline_mode<synchronous>, transform_indices = @transform_4, window_bounds = array<i64: 1, 64>}, {pipeline_mode = #tpu.pipeline_mode<synchronous>, transform_indices = @transform_5, window_bounds = array<i64: 1, 64>}, {pipeline_mode = #tpu.pipeline_mode<synchronous>, transform_indices = @transform_6, window_bounds = array<i64: 2, 64, 192>}, {pipeline_mode = #tpu.pipeline_mode<synchronous>, transform_indices = @transform_7, window_bounds = array<i64: 2, 1, 192>}, {pipeline_mode = #tpu.pipeline_mode<synchronous>, transform_indices = @transform_8, window_bounds = array<i64: 2, 64, 64>}, {pipeline_mode = #tpu.pipeline_mode<synchronous>, transform_indices = @transform_9, window_bounds = array<i64: 2, 1, 64>}, {pipeline_mode = #tpu.pipeline_mode<synchronous>, transform_indices = @transform_10, window_bounds = array<i64: 2, 1, 64>}, {pipeline_mode = #tpu.pipeline_mode<synchronous>, transform_indices = @transform_11, window_bounds = array<i64: 2, 1, 64>}, {pipeline_mode = #tpu.pipeline_mode<synchronous>, transform_indices = @transform_12, window_bounds = array<i64: 2, 64, 128>}, {pipeline_mode = #tpu.pipeline_mode<synchronous>, transform_indices = @transform_13, window_bounds = array<i64: 2, 1, 128>}, {pipeline_mode = #tpu.pipeline_mode<synchronous>, transform_indices = @transform_14, window_bounds = array<i64: 2, 128, 64>}, {pipeline_mode = #tpu.pipeline_mode<synchronous>, transform_indices = @transform_15, window_bounds = array<i64: 2, 1, 64>}, {pipeline_mode = #tpu.pipeline_mode<synchronous>, transform_indices = @transform_16, window_bounds = array<i64: 2, 1, 64>}, {pipeline_mode = #tpu.pipeline_mode<synchronous>, transform_indices = @transform_17, window_bounds = array<i64: 2, 1, 64>}, {pipeline_mode = #tpu.pipeline_mode<synchronous>, transform_indices = @transform_18, window_bounds = array<i64: 64, 128>}, {pipeline_mode = #tpu.pipeline_mode<synchronous>, transform_indices = @transform_19, window_bounds = array<i64: 1, 128>}, {pipeline_mode = #tpu.pipeline_mode<synchronous>, transform_indices = @transform_20, window_bounds = array<i64: 2, 128>}]} {
    %c0 = arith.constant 0 : index
    %c0_0 = arith.constant 0 : index
    %0 = vector.load %arg1[%c0, %c0_0] : memref<16x1xi32, #tpu.memory_space<vmem>>, vector<16x1xi32>
    %1 = tpu.iota {dimensions = array<i32: 1>} : vector<16x128xi32>
    %2 = vector.broadcast %0 : vector<16x1xi32> to vector<16x128xi32>
    %3 = arith.cmpi eq, %1, %2 : vector<16x128xi32>
    %4 = arith.extui %3 : vector<16x128xi1> to vector<16x128xi32>
    %5 = arith.sitofp %4 : vector<16x128xi32> to vector<16x128xf32>
    %c0_1 = arith.constant 0 : index
    %c0_2 = arith.constant 0 : index
    %6 = vector.load %arg3[%c0_1, %c0_2] : memref<128x64xf32, #tpu.memory_space<vmem>>, vector<128x64xf32>
    %cst = arith.constant dense<0.000000e+00> : vector<16x64xf32>
    %7 = tpu.matmul %5, %6, %cst {dimension_numbers = #tpu.dot_dimension_numbers<[1], [0], [0], [1], [0, 0, 1, 1], [], []>} : vector<16x128xf32>, vector<128x64xf32>, vector<16x64xf32> -> vector<16x64xf32>
    %c0_3 = arith.constant 0 : index
    %c0_4 = arith.constant 0 : index
    %8 = vector.load %arg4[%c0_3, %c0_4] : memref<8x64xf32, #tpu.memory_space<vmem>>, vector<8x64xf32>
    %9 = tpu.concatenate %8, %8 in 0 : vector<8x64xf32>, vector<8x64xf32> -> vector<16x64xf32>
    %10 = arith.addf %7, %9 : vector<16x64xf32>
    %c0_5 = arith.constant 0 : index
    %c0_6 = arith.constant 0 : index
    %11 = vector.load %arg5[%c0_5, %c0_6] : memref<1x64xf32, #tpu.memory_space<vmem>>, vector<1x64xf32>
    %c0_7 = arith.constant 0 : index
    %c0_8 = arith.constant 0 : index
    %12 = vector.load %arg6[%c0_7, %c0_8] : memref<1x64xf32, #tpu.memory_space<vmem>>, vector<1x64xf32>
    %cst_9 = arith.constant dense<0.000000e+00> : vector<16xf32>
    %13 = vector.multi_reduction <add>, %10, %cst_9 [1] : vector<16x64xf32> to vector<16xf32>
    %14 = vector.shape_cast %13 : vector<16xf32> to vector<16x1xf32>
    %cst_10 = arith.constant 6.400000e+01 : f32
    %15 = vector.broadcast %cst_10 : f32 to vector<16x1xf32>
    %16 = arith.divf %14, %15 : vector<16x1xf32>
    %17 = vector.broadcast %16 : vector<16x1xf32> to vector<16x64xf32>
    %18 = arith.subf %10, %17 : vector<16x64xf32>
    %19 = arith.mulf %18, %18 : vector<16x64xf32>
    %cst_11 = arith.constant dense<0.000000e+00> : vector<16xf32>
    %20 = vector.multi_reduction <add>, %19, %cst_11 [1] : vector<16x64xf32> to vector<16xf32>
    %21 = vector.shape_cast %20 : vector<16xf32> to vector<16x1xf32>
    %cst_12 = arith.constant 6.400000e+01 : f32
    %22 = vector.broadcast %cst_12 : f32 to vector<16x1xf32>
    %23 = arith.divf %21, %22 : vector<16x1xf32>
    %24 = vector.broadcast %16 : vector<16x1xf32> to vector<16x64xf32>
    %25 = arith.subf %10, %24 : vector<16x64xf32>
    %cst_13 = arith.constant 9.99999974E-6 : f32
    %26 = vector.broadcast %cst_13 : f32 to vector<16x1xf32>
    %27 = arith.addf %23, %26 : vector<16x1xf32>
    %28 = math.rsqrt %27 : vector<16x1xf32>
    %29 = vector.broadcast %28 : vector<16x1xf32> to vector<16x64xf32>
    %30 = arith.mulf %25, %29 : vector<16x64xf32>
    %31 = vector.broadcast %11 : vector<1x64xf32> to vector<16x64xf32>
    %32 = arith.mulf %30, %31 : vector<16x64xf32>
    %33 = vector.broadcast %12 : vector<1x64xf32> to vector<16x64xf32>
    %34 = arith.addf %32, %33 : vector<16x64xf32>
    %c0_14 = arith.constant 0 : index
    %c0_15 = arith.constant 0 : index
    %35 = vector.load %arg2[%c0_14, %c0_15] : memref<2x8xf32, #tpu.memory_space<vmem>>, vector<2x8xf32>
    %cst_16 = arith.constant 1.000000e+00 : f32
    %36 = vector.broadcast %cst_16 : f32 to vector<2x8xf32>
    %37 = arith.subf %36, %35 : vector<2x8xf32>
    %cst_17 = arith.constant -1.000000e+09 : f32
    %38 = vector.broadcast %cst_17 : f32 to vector<2x8xf32>
    %39 = arith.mulf %37, %38 : vector<2x8xf32>
    %c0_18 = arith.constant 0 : index
    %c0_19 = arith.constant 0 : index
    %c0_20 = arith.constant 0 : index
    %40 = vector.load %arg7[%c0_18, %c0_19, %c0_20] : memref<2x64x192xf32, #tpu.memory_space<vmem>>, vector<1x64x192xf32>
    %41 = vector.shape_cast %40 : vector<1x64x192xf32> to vector<64x192xf32>
    %cst_21 = arith.constant dense<0.000000e+00> : vector<16x192xf32>
    %42 = tpu.matmul %34, %41, %cst_21 {dimension_numbers = #tpu.dot_dimension_numbers<[1], [0], [0], [1], [0, 0, 1, 1], [], []>} : vector<16x64xf32>, vector<64x192xf32>, vector<16x192xf32> -> vector<16x192xf32>
    %c0_22 = arith.constant 0 : index
    %c0_23 = arith.constant 0 : index
    %c0_24 = arith.constant 0 : index
    %43 = vector.load %arg8[%c0_22, %c0_23, %c0_24] : memref<2x1x192xf32, #tpu.memory_space<vmem>>, vector<1x1x192xf32>
    %44 = vector.shape_cast %43 : vector<1x1x192xf32> to vector<1x192xf32>
    %45 = vector.broadcast %44 : vector<1x192xf32> to vector<16x192xf32>
    %46 = arith.addf %42, %45 : vector<16x192xf32>
    %47 = vector.extract_strided_slice %39 {offsets = [0, 0], sizes = [1, 8], strides = [1, 1]} : vector<2x8xf32> to vector<1x8xf32>
    %48 = vector.extract_strided_slice %46 {offsets = [0, 0], sizes = [8, 32], strides = [1, 1]} : vector<16x192xf32> to vector<8x32xf32>
    %49 = vector.extract_strided_slice %46 {offsets = [0, 64], sizes = [8, 32], strides = [1, 1]} : vector<16x192xf32> to vector<8x32xf32>
    %50 = vector.extract_strided_slice %46 {offsets = [0, 128], sizes = [8, 32], strides = [1, 1]} : vector<16x192xf32> to vector<8x32xf32>
    %cst_25 = arith.constant dense<0.000000e+00> : vector<8x8xf32>
    %51 = tpu.matmul %48, %49, %cst_25 {dimension_numbers = #tpu.dot_dimension_numbers<[1], [1], [0], [0], [0, 0, 1, 0], [], []>} : vector<8x32xf32>, vector<8x32xf32>, vector<8x8xf32> -> vector<8x8xf32>
    %cst_26 = arith.constant 0.176776692 : f32
    %52 = vector.broadcast %cst_26 : f32 to vector<8x8xf32>
    %53 = arith.mulf %51, %52 : vector<8x8xf32>
    %54 = vector.broadcast %47 : vector<1x8xf32> to vector<8x8xf32>
    %55 = arith.addf %53, %54 : vector<8x8xf32>
    %cst_27 = arith.constant dense<0xFF800000> : vector<8xf32>
    %56 = vector.multi_reduction <maximumf>, %55, %cst_27 [1] : vector<8x8xf32> to vector<8xf32>
    %57 = vector.shape_cast %56 : vector<8xf32> to vector<8x1xf32>
    %58 = vector.broadcast %57 : vector<8x1xf32> to vector<8x8xf32>
    %59 = arith.subf %55, %58 : vector<8x8xf32>
    %60 = math.exp %59 : vector<8x8xf32>
    %cst_28 = arith.constant dense<0.000000e+00> : vector<8xf32>
    %61 = vector.multi_reduction <add>, %60, %cst_28 [1] : vector<8x8xf32> to vector<8xf32>
    %62 = vector.shape_cast %61 : vector<8xf32> to vector<8x1xf32>
    %63 = tpu.reciprocal %62 {approx = true} : vector<8x1xf32> -> vector<8x1xf32>
    %64 = vector.broadcast %63 : vector<8x1xf32> to vector<8x8xf32>
    %65 = arith.mulf %60, %64 : vector<8x8xf32>
    %cst_29 = arith.constant dense<0.000000e+00> : vector<8x32xf32>
    %66 = tpu.matmul %65, %50, %cst_29 {dimension_numbers = #tpu.dot_dimension_numbers<[1], [0], [0], [1], [0, 0, 1, 1], [], []>} : vector<8x8xf32>, vector<8x32xf32>, vector<8x32xf32> -> vector<8x32xf32>
    %67 = vector.extract_strided_slice %46 {offsets = [0, 32], sizes = [8, 32], strides = [1, 1]} : vector<16x192xf32> to vector<8x32xf32>
    %68 = vector.extract_strided_slice %46 {offsets = [0, 96], sizes = [8, 32], strides = [1, 1]} : vector<16x192xf32> to vector<8x32xf32>
    %69 = vector.extract_strided_slice %46 {offsets = [0, 160], sizes = [8, 32], strides = [1, 1]} : vector<16x192xf32> to vector<8x32xf32>
    %cst_30 = arith.constant dense<0.000000e+00> : vector<8x8xf32>
    %70 = tpu.matmul %67, %68, %cst_30 {dimension_numbers = #tpu.dot_dimension_numbers<[1], [1], [0], [0], [0, 0, 1, 0], [], []>} : vector<8x32xf32>, vector<8x32xf32>, vector<8x8xf32> -> vector<8x8xf32>
    %cst_31 = arith.constant 0.176776692 : f32
    %71 = vector.broadcast %cst_31 : f32 to vector<8x8xf32>
    %72 = arith.mulf %70, %71 : vector<8x8xf32>
    %73 = vector.broadcast %47 : vector<1x8xf32> to vector<8x8xf32>
    %74 = arith.addf %72, %73 : vector<8x8xf32>
    %cst_32 = arith.constant dense<0xFF800000> : vector<8xf32>
    %75 = vector.multi_reduction <maximumf>, %74, %cst_32 [1] : vector<8x8xf32> to vector<8xf32>
    %76 = vector.shape_cast %75 : vector<8xf32> to vector<8x1xf32>
    %77 = vector.broadcast %76 : vector<8x1xf32> to vector<8x8xf32>
    %78 = arith.subf %74, %77 : vector<8x8xf32>
    %79 = math.exp %78 : vector<8x8xf32>
    %cst_33 = arith.constant dense<0.000000e+00> : vector<8xf32>
    %80 = vector.multi_reduction <add>, %79, %cst_33 [1] : vector<8x8xf32> to vector<8xf32>
    %81 = vector.shape_cast %80 : vector<8xf32> to vector<8x1xf32>
    %82 = tpu.reciprocal %81 {approx = true} : vector<8x1xf32> -> vector<8x1xf32>
    %83 = vector.broadcast %82 : vector<8x1xf32> to vector<8x8xf32>
    %84 = arith.mulf %79, %83 : vector<8x8xf32>
    %cst_34 = arith.constant dense<0.000000e+00> : vector<8x32xf32>
    %85 = tpu.matmul %84, %69, %cst_34 {dimension_numbers = #tpu.dot_dimension_numbers<[1], [0], [0], [1], [0, 0, 1, 1], [], []>} : vector<8x8xf32>, vector<8x32xf32>, vector<8x32xf32> -> vector<8x32xf32>
    %86 = tpu.concatenate %66, %85 in 1 : vector<8x32xf32>, vector<8x32xf32> -> vector<8x64xf32>
    %87 = vector.extract_strided_slice %39 {offsets = [1, 0], sizes = [1, 8], strides = [1, 1]} : vector<2x8xf32> to vector<1x8xf32>
    %88 = vector.extract_strided_slice %46 {offsets = [8, 0], sizes = [8, 32], strides = [1, 1]} : vector<16x192xf32> to vector<8x32xf32>
    %89 = vector.extract_strided_slice %46 {offsets = [8, 64], sizes = [8, 32], strides = [1, 1]} : vector<16x192xf32> to vector<8x32xf32>
    %90 = vector.extract_strided_slice %46 {offsets = [8, 128], sizes = [8, 32], strides = [1, 1]} : vector<16x192xf32> to vector<8x32xf32>
    %cst_35 = arith.constant dense<0.000000e+00> : vector<8x8xf32>
    %91 = tpu.matmul %88, %89, %cst_35 {dimension_numbers = #tpu.dot_dimension_numbers<[1], [1], [0], [0], [0, 0, 1, 0], [], []>} : vector<8x32xf32>, vector<8x32xf32>, vector<8x8xf32> -> vector<8x8xf32>
    %cst_36 = arith.constant 0.176776692 : f32
    %92 = vector.broadcast %cst_36 : f32 to vector<8x8xf32>
    %93 = arith.mulf %91, %92 : vector<8x8xf32>
    %94 = vector.broadcast %87 : vector<1x8xf32> to vector<8x8xf32>
    %95 = arith.addf %93, %94 : vector<8x8xf32>
    %cst_37 = arith.constant dense<0xFF800000> : vector<8xf32>
    %96 = vector.multi_reduction <maximumf>, %95, %cst_37 [1] : vector<8x8xf32> to vector<8xf32>
    %97 = vector.shape_cast %96 : vector<8xf32> to vector<8x1xf32>
    %98 = vector.broadcast %97 : vector<8x1xf32> to vector<8x8xf32>
    %99 = arith.subf %95, %98 : vector<8x8xf32>
    %100 = math.exp %99 : vector<8x8xf32>
    %cst_38 = arith.constant dense<0.000000e+00> : vector<8xf32>
    %101 = vector.multi_reduction <add>, %100, %cst_38 [1] : vector<8x8xf32> to vector<8xf32>
    %102 = vector.shape_cast %101 : vector<8xf32> to vector<8x1xf32>
    %103 = tpu.reciprocal %102 {approx = true} : vector<8x1xf32> -> vector<8x1xf32>
    %104 = vector.broadcast %103 : vector<8x1xf32> to vector<8x8xf32>
    %105 = arith.mulf %100, %104 : vector<8x8xf32>
    %cst_39 = arith.constant dense<0.000000e+00> : vector<8x32xf32>
    %106 = tpu.matmul %105, %90, %cst_39 {dimension_numbers = #tpu.dot_dimension_numbers<[1], [0], [0], [1], [0, 0, 1, 1], [], []>} : vector<8x8xf32>, vector<8x32xf32>, vector<8x32xf32> -> vector<8x32xf32>
    %107 = vector.extract_strided_slice %46 {offsets = [8, 32], sizes = [8, 32], strides = [1, 1]} : vector<16x192xf32> to vector<8x32xf32>
    %108 = vector.extract_strided_slice %46 {offsets = [8, 96], sizes = [8, 32], strides = [1, 1]} : vector<16x192xf32> to vector<8x32xf32>
    %109 = vector.extract_strided_slice %46 {offsets = [8, 160], sizes = [8, 32], strides = [1, 1]} : vector<16x192xf32> to vector<8x32xf32>
    %cst_40 = arith.constant dense<0.000000e+00> : vector<8x8xf32>
    %110 = tpu.matmul %107, %108, %cst_40 {dimension_numbers = #tpu.dot_dimension_numbers<[1], [1], [0], [0], [0, 0, 1, 0], [], []>} : vector<8x32xf32>, vector<8x32xf32>, vector<8x8xf32> -> vector<8x8xf32>
    %cst_41 = arith.constant 0.176776692 : f32
    %111 = vector.broadcast %cst_41 : f32 to vector<8x8xf32>
    %112 = arith.mulf %110, %111 : vector<8x8xf32>
    %113 = vector.broadcast %87 : vector<1x8xf32> to vector<8x8xf32>
    %114 = arith.addf %112, %113 : vector<8x8xf32>
    %cst_42 = arith.constant dense<0xFF800000> : vector<8xf32>
    %115 = vector.multi_reduction <maximumf>, %114, %cst_42 [1] : vector<8x8xf32> to vector<8xf32>
    %116 = vector.shape_cast %115 : vector<8xf32> to vector<8x1xf32>
    %117 = vector.broadcast %116 : vector<8x1xf32> to vector<8x8xf32>
    %118 = arith.subf %114, %117 : vector<8x8xf32>
    %119 = math.exp %118 : vector<8x8xf32>
    %cst_43 = arith.constant dense<0.000000e+00> : vector<8xf32>
    %120 = vector.multi_reduction <add>, %119, %cst_43 [1] : vector<8x8xf32> to vector<8xf32>
    %121 = vector.shape_cast %120 : vector<8xf32> to vector<8x1xf32>
    %122 = tpu.reciprocal %121 {approx = true} : vector<8x1xf32> -> vector<8x1xf32>
    %123 = vector.broadcast %122 : vector<8x1xf32> to vector<8x8xf32>
    %124 = arith.mulf %119, %123 : vector<8x8xf32>
    %cst_44 = arith.constant dense<0.000000e+00> : vector<8x32xf32>
    %125 = tpu.matmul %124, %109, %cst_44 {dimension_numbers = #tpu.dot_dimension_numbers<[1], [0], [0], [1], [0, 0, 1, 1], [], []>} : vector<8x8xf32>, vector<8x32xf32>, vector<8x32xf32> -> vector<8x32xf32>
    %126 = tpu.concatenate %106, %125 in 1 : vector<8x32xf32>, vector<8x32xf32> -> vector<8x64xf32>
    %127 = tpu.concatenate %86, %126 in 0 : vector<8x64xf32>, vector<8x64xf32> -> vector<16x64xf32>
    %c0_45 = arith.constant 0 : index
    %c0_46 = arith.constant 0 : index
    %c0_47 = arith.constant 0 : index
    %128 = vector.load %arg9[%c0_45, %c0_46, %c0_47] : memref<2x64x64xf32, #tpu.memory_space<vmem>>, vector<1x64x64xf32>
    %129 = vector.shape_cast %128 : vector<1x64x64xf32> to vector<64x64xf32>
    %cst_48 = arith.constant dense<0.000000e+00> : vector<16x64xf32>
    %130 = tpu.matmul %127, %129, %cst_48 {dimension_numbers = #tpu.dot_dimension_numbers<[1], [0], [0], [1], [0, 0, 1, 1], [], []>} : vector<16x64xf32>, vector<64x64xf32>, vector<16x64xf32> -> vector<16x64xf32>
    %c0_49 = arith.constant 0 : index
    %c0_50 = arith.constant 0 : index
    %c0_51 = arith.constant 0 : index
    %131 = vector.load %arg10[%c0_49, %c0_50, %c0_51] : memref<2x1x64xf32, #tpu.memory_space<vmem>>, vector<1x1x64xf32>
    %132 = vector.shape_cast %131 : vector<1x1x64xf32> to vector<1x64xf32>
    %133 = vector.broadcast %132 : vector<1x64xf32> to vector<16x64xf32>
    %134 = arith.addf %130, %133 : vector<16x64xf32>
    %135 = arith.addf %134, %34 : vector<16x64xf32>
    %c0_52 = arith.constant 0 : index
    %c0_53 = arith.constant 0 : index
    %c0_54 = arith.constant 0 : index
    %136 = vector.load %arg11[%c0_52, %c0_53, %c0_54] : memref<2x1x64xf32, #tpu.memory_space<vmem>>, vector<1x1x64xf32>
    %137 = vector.shape_cast %136 : vector<1x1x64xf32> to vector<1x64xf32>
    %c0_55 = arith.constant 0 : index
    %c0_56 = arith.constant 0 : index
    %c0_57 = arith.constant 0 : index
    %138 = vector.load %arg12[%c0_55, %c0_56, %c0_57] : memref<2x1x64xf32, #tpu.memory_space<vmem>>, vector<1x1x64xf32>
    %139 = vector.shape_cast %138 : vector<1x1x64xf32> to vector<1x64xf32>
    %cst_58 = arith.constant dense<0.000000e+00> : vector<16xf32>
    %140 = vector.multi_reduction <add>, %135, %cst_58 [1] : vector<16x64xf32> to vector<16xf32>
    %141 = vector.shape_cast %140 : vector<16xf32> to vector<16x1xf32>
    %cst_59 = arith.constant 6.400000e+01 : f32
    %142 = vector.broadcast %cst_59 : f32 to vector<16x1xf32>
    %143 = arith.divf %141, %142 : vector<16x1xf32>
    %144 = vector.broadcast %143 : vector<16x1xf32> to vector<16x64xf32>
    %145 = arith.subf %135, %144 : vector<16x64xf32>
    %146 = arith.mulf %145, %145 : vector<16x64xf32>
    %cst_60 = arith.constant dense<0.000000e+00> : vector<16xf32>
    %147 = vector.multi_reduction <add>, %146, %cst_60 [1] : vector<16x64xf32> to vector<16xf32>
    %148 = vector.shape_cast %147 : vector<16xf32> to vector<16x1xf32>
    %cst_61 = arith.constant 6.400000e+01 : f32
    %149 = vector.broadcast %cst_61 : f32 to vector<16x1xf32>
    %150 = arith.divf %148, %149 : vector<16x1xf32>
    %151 = vector.broadcast %143 : vector<16x1xf32> to vector<16x64xf32>
    %152 = arith.subf %135, %151 : vector<16x64xf32>
    %cst_62 = arith.constant 9.99999974E-6 : f32
    %153 = vector.broadcast %cst_62 : f32 to vector<16x1xf32>
    %154 = arith.addf %150, %153 : vector<16x1xf32>
    %155 = math.rsqrt %154 : vector<16x1xf32>
    %156 = vector.broadcast %155 : vector<16x1xf32> to vector<16x64xf32>
    %157 = arith.mulf %152, %156 : vector<16x64xf32>
    %158 = vector.broadcast %137 : vector<1x64xf32> to vector<16x64xf32>
    %159 = arith.mulf %157, %158 : vector<16x64xf32>
    %160 = vector.broadcast %139 : vector<1x64xf32> to vector<16x64xf32>
    %161 = arith.addf %159, %160 : vector<16x64xf32>
    %c0_63 = arith.constant 0 : index
    %c0_64 = arith.constant 0 : index
    %c0_65 = arith.constant 0 : index
    %162 = vector.load %arg13[%c0_63, %c0_64, %c0_65] : memref<2x64x128xf32, #tpu.memory_space<vmem>>, vector<1x64x128xf32>
    %163 = vector.shape_cast %162 : vector<1x64x128xf32> to vector<64x128xf32>
    %cst_66 = arith.constant dense<0.000000e+00> : vector<16x128xf32>
    %164 = tpu.matmul %161, %163, %cst_66 {dimension_numbers = #tpu.dot_dimension_numbers<[1], [0], [0], [1], [0, 0, 1, 1], [], []>} : vector<16x64xf32>, vector<64x128xf32>, vector<16x128xf32> -> vector<16x128xf32>
    %c0_67 = arith.constant 0 : index
    %c0_68 = arith.constant 0 : index
    %c0_69 = arith.constant 0 : index
    %165 = vector.load %arg14[%c0_67, %c0_68, %c0_69] : memref<2x1x128xf32, #tpu.memory_space<vmem>>, vector<1x1x128xf32>
    %166 = vector.shape_cast %165 : vector<1x1x128xf32> to vector<1x128xf32>
    %167 = vector.broadcast %166 : vector<1x128xf32> to vector<16x128xf32>
    %168 = arith.addf %164, %167 : vector<16x128xf32>
    %cst_70 = arith.constant 5.000000e-01 : f32
    %169 = vector.broadcast %cst_70 : f32 to vector<16x128xf32>
    %170 = arith.mulf %169, %168 : vector<16x128xf32>
    %cst_71 = arith.constant 4.471500e-02 : f32
    %171 = vector.broadcast %cst_71 : f32 to vector<16x128xf32>
    %172 = arith.mulf %171, %168 : vector<16x128xf32>
    %173 = arith.mulf %172, %168 : vector<16x128xf32>
    %174 = arith.mulf %173, %168 : vector<16x128xf32>
    %175 = arith.addf %168, %174 : vector<16x128xf32>
    %cst_72 = arith.constant 0.797884583 : f32
    %176 = vector.broadcast %cst_72 : f32 to vector<16x128xf32>
    %177 = arith.mulf %176, %175 : vector<16x128xf32>
    %178 = math.tanh %177 : vector<16x128xf32>
    %cst_73 = arith.constant 1.000000e+00 : f32
    %179 = vector.broadcast %cst_73 : f32 to vector<16x128xf32>
    %180 = arith.addf %179, %178 : vector<16x128xf32>
    %181 = arith.mulf %170, %180 : vector<16x128xf32>
    %c0_74 = arith.constant 0 : index
    %c0_75 = arith.constant 0 : index
    %c0_76 = arith.constant 0 : index
    %182 = vector.load %arg15[%c0_74, %c0_75, %c0_76] : memref<2x128x64xf32, #tpu.memory_space<vmem>>, vector<1x128x64xf32>
    %183 = vector.shape_cast %182 : vector<1x128x64xf32> to vector<128x64xf32>
    %cst_77 = arith.constant dense<0.000000e+00> : vector<16x64xf32>
    %184 = tpu.matmul %181, %183, %cst_77 {dimension_numbers = #tpu.dot_dimension_numbers<[1], [0], [0], [1], [0, 0, 1, 1], [], []>} : vector<16x128xf32>, vector<128x64xf32>, vector<16x64xf32> -> vector<16x64xf32>
    %c0_78 = arith.constant 0 : index
    %c0_79 = arith.constant 0 : index
    %c0_80 = arith.constant 0 : index
    %185 = vector.load %arg16[%c0_78, %c0_79, %c0_80] : memref<2x1x64xf32, #tpu.memory_space<vmem>>, vector<1x1x64xf32>
    %186 = vector.shape_cast %185 : vector<1x1x64xf32> to vector<1x64xf32>
    %187 = vector.broadcast %186 : vector<1x64xf32> to vector<16x64xf32>
    %188 = arith.addf %184, %187 : vector<16x64xf32>
    %189 = arith.addf %188, %161 : vector<16x64xf32>
    %c0_81 = arith.constant 0 : index
    %c0_82 = arith.constant 0 : index
    %c0_83 = arith.constant 0 : index
    %190 = vector.load %arg17[%c0_81, %c0_82, %c0_83] : memref<2x1x64xf32, #tpu.memory_space<vmem>>, vector<1x1x64xf32>
    %191 = vector.shape_cast %190 : vector<1x1x64xf32> to vector<1x64xf32>
    %c0_84 = arith.constant 0 : index
    %c0_85 = arith.constant 0 : index
    %c0_86 = arith.constant 0 : index
    %192 = vector.load %arg18[%c0_84, %c0_85, %c0_86] : memref<2x1x64xf32, #tpu.memory_space<vmem>>, vector<1x1x64xf32>
    %193 = vector.shape_cast %192 : vector<1x1x64xf32> to vector<1x64xf32>
    %cst_87 = arith.constant dense<0.000000e+00> : vector<16xf32>
    %194 = vector.multi_reduction <add>, %189, %cst_87 [1] : vector<16x64xf32> to vector<16xf32>
    %195 = vector.shape_cast %194 : vector<16xf32> to vector<16x1xf32>
    %cst_88 = arith.constant 6.400000e+01 : f32
    %196 = vector.broadcast %cst_88 : f32 to vector<16x1xf32>
    %197 = arith.divf %195, %196 : vector<16x1xf32>
    %198 = vector.broadcast %197 : vector<16x1xf32> to vector<16x64xf32>
    %199 = arith.subf %189, %198 : vector<16x64xf32>
    %200 = arith.mulf %199, %199 : vector<16x64xf32>
    %cst_89 = arith.constant dense<0.000000e+00> : vector<16xf32>
    %201 = vector.multi_reduction <add>, %200, %cst_89 [1] : vector<16x64xf32> to vector<16xf32>
    %202 = vector.shape_cast %201 : vector<16xf32> to vector<16x1xf32>
    %cst_90 = arith.constant 6.400000e+01 : f32
    %203 = vector.broadcast %cst_90 : f32 to vector<16x1xf32>
    %204 = arith.divf %202, %203 : vector<16x1xf32>
    %205 = vector.broadcast %197 : vector<16x1xf32> to vector<16x64xf32>
    %206 = arith.subf %189, %205 : vector<16x64xf32>
    %cst_91 = arith.constant 9.99999974E-6 : f32
    %207 = vector.broadcast %cst_91 : f32 to vector<16x1xf32>
    %208 = arith.addf %204, %207 : vector<16x1xf32>
    %209 = math.rsqrt %208 : vector<16x1xf32>
    %210 = vector.broadcast %209 : vector<16x1xf32> to vector<16x64xf32>
    %211 = arith.mulf %206, %210 : vector<16x64xf32>
    %212 = vector.broadcast %191 : vector<1x64xf32> to vector<16x64xf32>
    %213 = arith.mulf %211, %212 : vector<16x64xf32>
    %214 = vector.broadcast %193 : vector<1x64xf32> to vector<16x64xf32>
    %215 = arith.addf %213, %214 : vector<16x64xf32>
    %c1 = arith.constant 1 : index
    %c0_92 = arith.constant 0 : index
    %c0_93 = arith.constant 0 : index
    %216 = vector.load %arg7[%c1, %c0_92, %c0_93] : memref<2x64x192xf32, #tpu.memory_space<vmem>>, vector<1x64x192xf32>
    %217 = vector.shape_cast %216 : vector<1x64x192xf32> to vector<64x192xf32>
    %cst_94 = arith.constant dense<0.000000e+00> : vector<16x192xf32>
    %218 = tpu.matmul %215, %217, %cst_94 {dimension_numbers = #tpu.dot_dimension_numbers<[1], [0], [0], [1], [0, 0, 1, 1], [], []>} : vector<16x64xf32>, vector<64x192xf32>, vector<16x192xf32> -> vector<16x192xf32>
    %c1_95 = arith.constant 1 : index
    %c0_96 = arith.constant 0 : index
    %c0_97 = arith.constant 0 : index
    %219 = vector.load %arg8[%c1_95, %c0_96, %c0_97] : memref<2x1x192xf32, #tpu.memory_space<vmem>>, vector<1x1x192xf32>
    %220 = vector.shape_cast %219 : vector<1x1x192xf32> to vector<1x192xf32>
    %221 = vector.broadcast %220 : vector<1x192xf32> to vector<16x192xf32>
    %222 = arith.addf %218, %221 : vector<16x192xf32>
    %223 = vector.extract_strided_slice %39 {offsets = [0, 0], sizes = [1, 8], strides = [1, 1]} : vector<2x8xf32> to vector<1x8xf32>
    %224 = vector.extract_strided_slice %222 {offsets = [0, 0], sizes = [8, 32], strides = [1, 1]} : vector<16x192xf32> to vector<8x32xf32>
    %225 = vector.extract_strided_slice %222 {offsets = [0, 64], sizes = [8, 32], strides = [1, 1]} : vector<16x192xf32> to vector<8x32xf32>
    %226 = vector.extract_strided_slice %222 {offsets = [0, 128], sizes = [8, 32], strides = [1, 1]} : vector<16x192xf32> to vector<8x32xf32>
    %cst_98 = arith.constant dense<0.000000e+00> : vector<8x8xf32>
    %227 = tpu.matmul %224, %225, %cst_98 {dimension_numbers = #tpu.dot_dimension_numbers<[1], [1], [0], [0], [0, 0, 1, 0], [], []>} : vector<8x32xf32>, vector<8x32xf32>, vector<8x8xf32> -> vector<8x8xf32>
    %cst_99 = arith.constant 0.176776692 : f32
    %228 = vector.broadcast %cst_99 : f32 to vector<8x8xf32>
    %229 = arith.mulf %227, %228 : vector<8x8xf32>
    %230 = vector.broadcast %223 : vector<1x8xf32> to vector<8x8xf32>
    %231 = arith.addf %229, %230 : vector<8x8xf32>
    %cst_100 = arith.constant dense<0xFF800000> : vector<8xf32>
    %232 = vector.multi_reduction <maximumf>, %231, %cst_100 [1] : vector<8x8xf32> to vector<8xf32>
    %233 = vector.shape_cast %232 : vector<8xf32> to vector<8x1xf32>
    %234 = vector.broadcast %233 : vector<8x1xf32> to vector<8x8xf32>
    %235 = arith.subf %231, %234 : vector<8x8xf32>
    %236 = math.exp %235 : vector<8x8xf32>
    %cst_101 = arith.constant dense<0.000000e+00> : vector<8xf32>
    %237 = vector.multi_reduction <add>, %236, %cst_101 [1] : vector<8x8xf32> to vector<8xf32>
    %238 = vector.shape_cast %237 : vector<8xf32> to vector<8x1xf32>
    %239 = tpu.reciprocal %238 {approx = true} : vector<8x1xf32> -> vector<8x1xf32>
    %240 = vector.broadcast %239 : vector<8x1xf32> to vector<8x8xf32>
    %241 = arith.mulf %236, %240 : vector<8x8xf32>
    %cst_102 = arith.constant dense<0.000000e+00> : vector<8x32xf32>
    %242 = tpu.matmul %241, %226, %cst_102 {dimension_numbers = #tpu.dot_dimension_numbers<[1], [0], [0], [1], [0, 0, 1, 1], [], []>} : vector<8x8xf32>, vector<8x32xf32>, vector<8x32xf32> -> vector<8x32xf32>
    %243 = vector.extract_strided_slice %222 {offsets = [0, 32], sizes = [8, 32], strides = [1, 1]} : vector<16x192xf32> to vector<8x32xf32>
    %244 = vector.extract_strided_slice %222 {offsets = [0, 96], sizes = [8, 32], strides = [1, 1]} : vector<16x192xf32> to vector<8x32xf32>
    %245 = vector.extract_strided_slice %222 {offsets = [0, 160], sizes = [8, 32], strides = [1, 1]} : vector<16x192xf32> to vector<8x32xf32>
    %cst_103 = arith.constant dense<0.000000e+00> : vector<8x8xf32>
    %246 = tpu.matmul %243, %244, %cst_103 {dimension_numbers = #tpu.dot_dimension_numbers<[1], [1], [0], [0], [0, 0, 1, 0], [], []>} : vector<8x32xf32>, vector<8x32xf32>, vector<8x8xf32> -> vector<8x8xf32>
    %cst_104 = arith.constant 0.176776692 : f32
    %247 = vector.broadcast %cst_104 : f32 to vector<8x8xf32>
    %248 = arith.mulf %246, %247 : vector<8x8xf32>
    %249 = vector.broadcast %223 : vector<1x8xf32> to vector<8x8xf32>
    %250 = arith.addf %248, %249 : vector<8x8xf32>
    %cst_105 = arith.constant dense<0xFF800000> : vector<8xf32>
    %251 = vector.multi_reduction <maximumf>, %250, %cst_105 [1] : vector<8x8xf32> to vector<8xf32>
    %252 = vector.shape_cast %251 : vector<8xf32> to vector<8x1xf32>
    %253 = vector.broadcast %252 : vector<8x1xf32> to vector<8x8xf32>
    %254 = arith.subf %250, %253 : vector<8x8xf32>
    %255 = math.exp %254 : vector<8x8xf32>
    %cst_106 = arith.constant dense<0.000000e+00> : vector<8xf32>
    %256 = vector.multi_reduction <add>, %255, %cst_106 [1] : vector<8x8xf32> to vector<8xf32>
    %257 = vector.shape_cast %256 : vector<8xf32> to vector<8x1xf32>
    %258 = tpu.reciprocal %257 {approx = true} : vector<8x1xf32> -> vector<8x1xf32>
    %259 = vector.broadcast %258 : vector<8x1xf32> to vector<8x8xf32>
    %260 = arith.mulf %255, %259 : vector<8x8xf32>
    %cst_107 = arith.constant dense<0.000000e+00> : vector<8x32xf32>
    %261 = tpu.matmul %260, %245, %cst_107 {dimension_numbers = #tpu.dot_dimension_numbers<[1], [0], [0], [1], [0, 0, 1, 1], [], []>} : vector<8x8xf32>, vector<8x32xf32>, vector<8x32xf32> -> vector<8x32xf32>
    %262 = tpu.concatenate %242, %261 in 1 : vector<8x32xf32>, vector<8x32xf32> -> vector<8x64xf32>
    %263 = vector.extract_strided_slice %39 {offsets = [1, 0], sizes = [1, 8], strides = [1, 1]} : vector<2x8xf32> to vector<1x8xf32>
    %264 = vector.extract_strided_slice %222 {offsets = [8, 0], sizes = [8, 32], strides = [1, 1]} : vector<16x192xf32> to vector<8x32xf32>
    %265 = vector.extract_strided_slice %222 {offsets = [8, 64], sizes = [8, 32], strides = [1, 1]} : vector<16x192xf32> to vector<8x32xf32>
    %266 = vector.extract_strided_slice %222 {offsets = [8, 128], sizes = [8, 32], strides = [1, 1]} : vector<16x192xf32> to vector<8x32xf32>
    %cst_108 = arith.constant dense<0.000000e+00> : vector<8x8xf32>
    %267 = tpu.matmul %264, %265, %cst_108 {dimension_numbers = #tpu.dot_dimension_numbers<[1], [1], [0], [0], [0, 0, 1, 0], [], []>} : vector<8x32xf32>, vector<8x32xf32>, vector<8x8xf32> -> vector<8x8xf32>
    %cst_109 = arith.constant 0.176776692 : f32
    %268 = vector.broadcast %cst_109 : f32 to vector<8x8xf32>
    %269 = arith.mulf %267, %268 : vector<8x8xf32>
    %270 = vector.broadcast %263 : vector<1x8xf32> to vector<8x8xf32>
    %271 = arith.addf %269, %270 : vector<8x8xf32>
    %cst_110 = arith.constant dense<0xFF800000> : vector<8xf32>
    %272 = vector.multi_reduction <maximumf>, %271, %cst_110 [1] : vector<8x8xf32> to vector<8xf32>
    %273 = vector.shape_cast %272 : vector<8xf32> to vector<8x1xf32>
    %274 = vector.broadcast %273 : vector<8x1xf32> to vector<8x8xf32>
    %275 = arith.subf %271, %274 : vector<8x8xf32>
    %276 = math.exp %275 : vector<8x8xf32>
    %cst_111 = arith.constant dense<0.000000e+00> : vector<8xf32>
    %277 = vector.multi_reduction <add>, %276, %cst_111 [1] : vector<8x8xf32> to vector<8xf32>
    %278 = vector.shape_cast %277 : vector<8xf32> to vector<8x1xf32>
    %279 = tpu.reciprocal %278 {approx = true} : vector<8x1xf32> -> vector<8x1xf32>
    %280 = vector.broadcast %279 : vector<8x1xf32> to vector<8x8xf32>
    %281 = arith.mulf %276, %280 : vector<8x8xf32>
    %cst_112 = arith.constant dense<0.000000e+00> : vector<8x32xf32>
    %282 = tpu.matmul %281, %266, %cst_112 {dimension_numbers = #tpu.dot_dimension_numbers<[1], [0], [0], [1], [0, 0, 1, 1], [], []>} : vector<8x8xf32>, vector<8x32xf32>, vector<8x32xf32> -> vector<8x32xf32>
    %283 = vector.extract_strided_slice %222 {offsets = [8, 32], sizes = [8, 32], strides = [1, 1]} : vector<16x192xf32> to vector<8x32xf32>
    %284 = vector.extract_strided_slice %222 {offsets = [8, 96], sizes = [8, 32], strides = [1, 1]} : vector<16x192xf32> to vector<8x32xf32>
    %285 = vector.extract_strided_slice %222 {offsets = [8, 160], sizes = [8, 32], strides = [1, 1]} : vector<16x192xf32> to vector<8x32xf32>
    %cst_113 = arith.constant dense<0.000000e+00> : vector<8x8xf32>
    %286 = tpu.matmul %283, %284, %cst_113 {dimension_numbers = #tpu.dot_dimension_numbers<[1], [1], [0], [0], [0, 0, 1, 0], [], []>} : vector<8x32xf32>, vector<8x32xf32>, vector<8x8xf32> -> vector<8x8xf32>
    %cst_114 = arith.constant 0.176776692 : f32
    %287 = vector.broadcast %cst_114 : f32 to vector<8x8xf32>
    %288 = arith.mulf %286, %287 : vector<8x8xf32>
    %289 = vector.broadcast %263 : vector<1x8xf32> to vector<8x8xf32>
    %290 = arith.addf %288, %289 : vector<8x8xf32>
    %cst_115 = arith.constant dense<0xFF800000> : vector<8xf32>
    %291 = vector.multi_reduction <maximumf>, %290, %cst_115 [1] : vector<8x8xf32> to vector<8xf32>
    %292 = vector.shape_cast %291 : vector<8xf32> to vector<8x1xf32>
    %293 = vector.broadcast %292 : vector<8x1xf32> to vector<8x8xf32>
    %294 = arith.subf %290, %293 : vector<8x8xf32>
    %295 = math.exp %294 : vector<8x8xf32>
    %cst_116 = arith.constant dense<0.000000e+00> : vector<8xf32>
    %296 = vector.multi_reduction <add>, %295, %cst_116 [1] : vector<8x8xf32> to vector<8xf32>
    %297 = vector.shape_cast %296 : vector<8xf32> to vector<8x1xf32>
    %298 = tpu.reciprocal %297 {approx = true} : vector<8x1xf32> -> vector<8x1xf32>
    %299 = vector.broadcast %298 : vector<8x1xf32> to vector<8x8xf32>
    %300 = arith.mulf %295, %299 : vector<8x8xf32>
    %cst_117 = arith.constant dense<0.000000e+00> : vector<8x32xf32>
    %301 = tpu.matmul %300, %285, %cst_117 {dimension_numbers = #tpu.dot_dimension_numbers<[1], [0], [0], [1], [0, 0, 1, 1], [], []>} : vector<8x8xf32>, vector<8x32xf32>, vector<8x32xf32> -> vector<8x32xf32>
    %302 = tpu.concatenate %282, %301 in 1 : vector<8x32xf32>, vector<8x32xf32> -> vector<8x64xf32>
    %303 = tpu.concatenate %262, %302 in 0 : vector<8x64xf32>, vector<8x64xf32> -> vector<16x64xf32>
    %c1_118 = arith.constant 1 : index
    %c0_119 = arith.constant 0 : index
    %c0_120 = arith.constant 0 : index
    %304 = vector.load %arg9[%c1_118, %c0_119, %c0_120] : memref<2x64x64xf32, #tpu.memory_space<vmem>>, vector<1x64x64xf32>
    %305 = vector.shape_cast %304 : vector<1x64x64xf32> to vector<64x64xf32>
    %cst_121 = arith.constant dense<0.000000e+00> : vector<16x64xf32>
    %306 = tpu.matmul %303, %305, %cst_121 {dimension_numbers = #tpu.dot_dimension_numbers<[1], [0], [0], [1], [0, 0, 1, 1], [], []>} : vector<16x64xf32>, vector<64x64xf32>, vector<16x64xf32> -> vector<16x64xf32>
    %c1_122 = arith.constant 1 : index
    %c0_123 = arith.constant 0 : index
    %c0_124 = arith.constant 0 : index
    %307 = vector.load %arg10[%c1_122, %c0_123, %c0_124] : memref<2x1x64xf32, #tpu.memory_space<vmem>>, vector<1x1x64xf32>
    %308 = vector.shape_cast %307 : vector<1x1x64xf32> to vector<1x64xf32>
    %309 = vector.broadcast %308 : vector<1x64xf32> to vector<16x64xf32>
    %310 = arith.addf %306, %309 : vector<16x64xf32>
    %311 = arith.addf %310, %215 : vector<16x64xf32>
    %c1_125 = arith.constant 1 : index
    %c0_126 = arith.constant 0 : index
    %c0_127 = arith.constant 0 : index
    %312 = vector.load %arg11[%c1_125, %c0_126, %c0_127] : memref<2x1x64xf32, #tpu.memory_space<vmem>>, vector<1x1x64xf32>
    %313 = vector.shape_cast %312 : vector<1x1x64xf32> to vector<1x64xf32>
    %c1_128 = arith.constant 1 : index
    %c0_129 = arith.constant 0 : index
    %c0_130 = arith.constant 0 : index
    %314 = vector.load %arg12[%c1_128, %c0_129, %c0_130] : memref<2x1x64xf32, #tpu.memory_space<vmem>>, vector<1x1x64xf32>
    %315 = vector.shape_cast %314 : vector<1x1x64xf32> to vector<1x64xf32>
    %cst_131 = arith.constant dense<0.000000e+00> : vector<16xf32>
    %316 = vector.multi_reduction <add>, %311, %cst_131 [1] : vector<16x64xf32> to vector<16xf32>
    %317 = vector.shape_cast %316 : vector<16xf32> to vector<16x1xf32>
    %cst_132 = arith.constant 6.400000e+01 : f32
    %318 = vector.broadcast %cst_132 : f32 to vector<16x1xf32>
    %319 = arith.divf %317, %318 : vector<16x1xf32>
    %320 = vector.broadcast %319 : vector<16x1xf32> to vector<16x64xf32>
    %321 = arith.subf %311, %320 : vector<16x64xf32>
    %322 = arith.mulf %321, %321 : vector<16x64xf32>
    %cst_133 = arith.constant dense<0.000000e+00> : vector<16xf32>
    %323 = vector.multi_reduction <add>, %322, %cst_133 [1] : vector<16x64xf32> to vector<16xf32>
    %324 = vector.shape_cast %323 : vector<16xf32> to vector<16x1xf32>
    %cst_134 = arith.constant 6.400000e+01 : f32
    %325 = vector.broadcast %cst_134 : f32 to vector<16x1xf32>
    %326 = arith.divf %324, %325 : vector<16x1xf32>
    %327 = vector.broadcast %319 : vector<16x1xf32> to vector<16x64xf32>
    %328 = arith.subf %311, %327 : vector<16x64xf32>
    %cst_135 = arith.constant 9.99999974E-6 : f32
    %329 = vector.broadcast %cst_135 : f32 to vector<16x1xf32>
    %330 = arith.addf %326, %329 : vector<16x1xf32>
    %331 = math.rsqrt %330 : vector<16x1xf32>
    %332 = vector.broadcast %331 : vector<16x1xf32> to vector<16x64xf32>
    %333 = arith.mulf %328, %332 : vector<16x64xf32>
    %334 = vector.broadcast %313 : vector<1x64xf32> to vector<16x64xf32>
    %335 = arith.mulf %333, %334 : vector<16x64xf32>
    %336 = vector.broadcast %315 : vector<1x64xf32> to vector<16x64xf32>
    %337 = arith.addf %335, %336 : vector<16x64xf32>
    %c1_136 = arith.constant 1 : index
    %c0_137 = arith.constant 0 : index
    %c0_138 = arith.constant 0 : index
    %338 = vector.load %arg13[%c1_136, %c0_137, %c0_138] : memref<2x64x128xf32, #tpu.memory_space<vmem>>, vector<1x64x128xf32>
    %339 = vector.shape_cast %338 : vector<1x64x128xf32> to vector<64x128xf32>
    %cst_139 = arith.constant dense<0.000000e+00> : vector<16x128xf32>
    %340 = tpu.matmul %337, %339, %cst_139 {dimension_numbers = #tpu.dot_dimension_numbers<[1], [0], [0], [1], [0, 0, 1, 1], [], []>} : vector<16x64xf32>, vector<64x128xf32>, vector<16x128xf32> -> vector<16x128xf32>
    %c1_140 = arith.constant 1 : index
    %c0_141 = arith.constant 0 : index
    %c0_142 = arith.constant 0 : index
    %341 = vector.load %arg14[%c1_140, %c0_141, %c0_142] : memref<2x1x128xf32, #tpu.memory_space<vmem>>, vector<1x1x128xf32>
    %342 = vector.shape_cast %341 : vector<1x1x128xf32> to vector<1x128xf32>
    %343 = vector.broadcast %342 : vector<1x128xf32> to vector<16x128xf32>
    %344 = arith.addf %340, %343 : vector<16x128xf32>
    %cst_143 = arith.constant 5.000000e-01 : f32
    %345 = vector.broadcast %cst_143 : f32 to vector<16x128xf32>
    %346 = arith.mulf %345, %344 : vector<16x128xf32>
    %cst_144 = arith.constant 4.471500e-02 : f32
    %347 = vector.broadcast %cst_144 : f32 to vector<16x128xf32>
    %348 = arith.mulf %347, %344 : vector<16x128xf32>
    %349 = arith.mulf %348, %344 : vector<16x128xf32>
    %350 = arith.mulf %349, %344 : vector<16x128xf32>
    %351 = arith.addf %344, %350 : vector<16x128xf32>
    %cst_145 = arith.constant 0.797884583 : f32
    %352 = vector.broadcast %cst_145 : f32 to vector<16x128xf32>
    %353 = arith.mulf %352, %351 : vector<16x128xf32>
    %354 = math.tanh %353 : vector<16x128xf32>
    %cst_146 = arith.constant 1.000000e+00 : f32
    %355 = vector.broadcast %cst_146 : f32 to vector<16x128xf32>
    %356 = arith.addf %355, %354 : vector<16x128xf32>
    %357 = arith.mulf %346, %356 : vector<16x128xf32>
    %c1_147 = arith.constant 1 : index
    %c0_148 = arith.constant 0 : index
    %c0_149 = arith.constant 0 : index
    %358 = vector.load %arg15[%c1_147, %c0_148, %c0_149] : memref<2x128x64xf32, #tpu.memory_space<vmem>>, vector<1x128x64xf32>
    %359 = vector.shape_cast %358 : vector<1x128x64xf32> to vector<128x64xf32>
    %cst_150 = arith.constant dense<0.000000e+00> : vector<16x64xf32>
    %360 = tpu.matmul %357, %359, %cst_150 {dimension_numbers = #tpu.dot_dimension_numbers<[1], [0], [0], [1], [0, 0, 1, 1], [], []>} : vector<16x128xf32>, vector<128x64xf32>, vector<16x64xf32> -> vector<16x64xf32>
    %c1_151 = arith.constant 1 : index
    %c0_152 = arith.constant 0 : index
    %c0_153 = arith.constant 0 : index
    %361 = vector.load %arg16[%c1_151, %c0_152, %c0_153] : memref<2x1x64xf32, #tpu.memory_space<vmem>>, vector<1x1x64xf32>
    %362 = vector.shape_cast %361 : vector<1x1x64xf32> to vector<1x64xf32>
    %363 = vector.broadcast %362 : vector<1x64xf32> to vector<16x64xf32>
    %364 = arith.addf %360, %363 : vector<16x64xf32>
    %365 = arith.addf %364, %337 : vector<16x64xf32>
    %c1_154 = arith.constant 1 : index
    %c0_155 = arith.constant 0 : index
    %c0_156 = arith.constant 0 : index
    %366 = vector.load %arg17[%c1_154, %c0_155, %c0_156] : memref<2x1x64xf32, #tpu.memory_space<vmem>>, vector<1x1x64xf32>
    %367 = vector.shape_cast %366 : vector<1x1x64xf32> to vector<1x64xf32>
    %c1_157 = arith.constant 1 : index
    %c0_158 = arith.constant 0 : index
    %c0_159 = arith.constant 0 : index
    %368 = vector.load %arg18[%c1_157, %c0_158, %c0_159] : memref<2x1x64xf32, #tpu.memory_space<vmem>>, vector<1x1x64xf32>
    %369 = vector.shape_cast %368 : vector<1x1x64xf32> to vector<1x64xf32>
    %cst_160 = arith.constant dense<0.000000e+00> : vector<16xf32>
    %370 = vector.multi_reduction <add>, %365, %cst_160 [1] : vector<16x64xf32> to vector<16xf32>
    %371 = vector.shape_cast %370 : vector<16xf32> to vector<16x1xf32>
    %cst_161 = arith.constant 6.400000e+01 : f32
    %372 = vector.broadcast %cst_161 : f32 to vector<16x1xf32>
    %373 = arith.divf %371, %372 : vector<16x1xf32>
    %374 = vector.broadcast %373 : vector<16x1xf32> to vector<16x64xf32>
    %375 = arith.subf %365, %374 : vector<16x64xf32>
    %376 = arith.mulf %375, %375 : vector<16x64xf32>
    %cst_162 = arith.constant dense<0.000000e+00> : vector<16xf32>
    %377 = vector.multi_reduction <add>, %376, %cst_162 [1] : vector<16x64xf32> to vector<16xf32>
    %378 = vector.shape_cast %377 : vector<16xf32> to vector<16x1xf32>
    %cst_163 = arith.constant 6.400000e+01 : f32
    %379 = vector.broadcast %cst_163 : f32 to vector<16x1xf32>
    %380 = arith.divf %378, %379 : vector<16x1xf32>
    %381 = vector.broadcast %373 : vector<16x1xf32> to vector<16x64xf32>
    %382 = arith.subf %365, %381 : vector<16x64xf32>
    %cst_164 = arith.constant 9.99999974E-6 : f32
    %383 = vector.broadcast %cst_164 : f32 to vector<16x1xf32>
    %384 = arith.addf %380, %383 : vector<16x1xf32>
    %385 = math.rsqrt %384 : vector<16x1xf32>
    %386 = vector.broadcast %385 : vector<16x1xf32> to vector<16x64xf32>
    %387 = arith.mulf %382, %386 : vector<16x64xf32>
    %388 = vector.broadcast %367 : vector<1x64xf32> to vector<16x64xf32>
    %389 = arith.mulf %387, %388 : vector<16x64xf32>
    %390 = vector.broadcast %369 : vector<1x64xf32> to vector<16x64xf32>
    %391 = arith.addf %389, %390 : vector<16x64xf32>
    %392 = vector.extract_strided_slice %391 {offsets = [0, 0], sizes = [1, 64], strides = [1, 1]} : vector<16x64xf32> to vector<1x64xf32>
    %393 = vector.extract_strided_slice %391 {offsets = [8, 0], sizes = [1, 64], strides = [1, 1]} : vector<16x64xf32> to vector<1x64xf32>
    %394 = tpu.concatenate %392, %393 in 0 : vector<1x64xf32>, vector<1x64xf32> -> vector<2x64xf32>
    %c0_165 = arith.constant 0 : index
    %c0_166 = arith.constant 0 : index
    %395 = vector.load %arg19[%c0_165, %c0_166] : memref<64x128xf32, #tpu.memory_space<vmem>>, vector<64x128xf32>
    %cst_167 = arith.constant dense<0.000000e+00> : vector<2x128xf32>
    %396 = tpu.matmul %394, %395, %cst_167 {dimension_numbers = #tpu.dot_dimension_numbers<[1], [0], [0], [1], [0, 0, 1, 1], [], []>} : vector<2x64xf32>, vector<64x128xf32>, vector<2x128xf32> -> vector<2x128xf32>
    %c0_168 = arith.constant 0 : index
    %c0_169 = arith.constant 0 : index
    %397 = vector.load %arg20[%c0_168, %c0_169] : memref<1x128xf32, #tpu.memory_space<vmem>>, vector<1x128xf32>
    %398 = vector.broadcast %397 : vector<1x128xf32> to vector<2x128xf32>
    %399 = arith.addf %396, %398 : vector<2x128xf32>
    %c0_170 = arith.constant 0 : index
    %c0_171 = arith.constant 0 : index
    %400 = vector.load %arg21[%c0_170, %c0_171] : memref<2x128xf32, #tpu.memory_space<vmem>>, vector<2x128xf32>
    tpu.vector_store %arg21[%c0_170, %c0_171], %399 {strides = array<i32>} : memref<2x128xf32, #tpu.memory_space<vmem>>, vector<2x128xf32>,
    return
  }
  func.func @transform_0(%arg0: i32) -> (i32, i32) {
    %c0_i32 = arith.constant 0 : i32
    %c0_i32_0 = arith.constant 0 : i32
    %c0_i32_1 = arith.constant 0 : i32
    return %c0_i32, %c0_i32_0 : i32, i32
  }
  func.func @transform_1(%arg0: i32) -> (i32, i32) {
    %c0_i32 = arith.constant 0 : i32
    %c0_i32_0 = arith.constant 0 : i32
    %c0_i32_1 = arith.constant 0 : i32
    return %c0_i32, %c0_i32_0 : i32, i32
  }
  func.func @transform_2(%arg0: i32) -> (i32, i32) {
    %c0_i32 = arith.constant 0 : i32
    %c0_i32_0 = arith.constant 0 : i32
    %c0_i32_1 = arith.constant 0 : i32
    return %c0_i32, %c0_i32_0 : i32, i32
  }
  func.func @transform_3(%arg0: i32) -> (i32, i32) {
    %c0_i32 = arith.constant 0 : i32
    %c0_i32_0 = arith.constant 0 : i32
    %c0_i32_1 = arith.constant 0 : i32
    return %c0_i32, %c0_i32_0 : i32, i32
  }
  func.func @transform_4(%arg0: i32) -> (i32, i32) {
    %c0_i32 = arith.constant 0 : i32
    %c0_i32_0 = arith.constant 0 : i32
    %c0_i32_1 = arith.constant 0 : i32
    return %c0_i32, %c0_i32_0 : i32, i32
  }
  func.func @transform_5(%arg0: i32) -> (i32, i32) {
    %c0_i32 = arith.constant 0 : i32
    %c0_i32_0 = arith.constant 0 : i32
    %c0_i32_1 = arith.constant 0 : i32
    return %c0_i32, %c0_i32_0 : i32, i32
  }
  func.func @transform_6(%arg0: i32) -> (i32, i32, i32) {
    %c0_i32 = arith.constant 0 : i32
    %c0_i32_0 = arith.constant 0 : i32
    %c0_i32_1 = arith.constant 0 : i32
    %c0_i32_2 = arith.constant 0 : i32
    return %c0_i32, %c0_i32_0, %c0_i32_1 : i32, i32, i32
  }
  func.func @transform_7(%arg0: i32) -> (i32, i32, i32) {
    %c0_i32 = arith.constant 0 : i32
    %c0_i32_0 = arith.constant 0 : i32
    %c0_i32_1 = arith.constant 0 : i32
    %c0_i32_2 = arith.constant 0 : i32
    return %c0_i32, %c0_i32_0, %c0_i32_1 : i32, i32, i32
  }
  func.func @transform_8(%arg0: i32) -> (i32, i32, i32) {
    %c0_i32 = arith.constant 0 : i32
    %c0_i32_0 = arith.constant 0 : i32
    %c0_i32_1 = arith.constant 0 : i32
    %c0_i32_2 = arith.constant 0 : i32
    return %c0_i32, %c0_i32_0, %c0_i32_1 : i32, i32, i32
  }
  func.func @transform_9(%arg0: i32) -> (i32, i32, i32) {
    %c0_i32 = arith.constant 0 : i32
    %c0_i32_0 = arith.constant 0 : i32
    %c0_i32_1 = arith.constant 0 : i32
    %c0_i32_2 = arith.constant 0 : i32
    return %c0_i32, %c0_i32_0, %c0_i32_1 : i32, i32, i32
  }
  func.func @transform_10(%arg0: i32) -> (i32, i32, i32) {
    %c0_i32 = arith.constant 0 : i32
    %c0_i32_0 = arith.constant 0 : i32
    %c0_i32_1 = arith.constant 0 : i32
    %c0_i32_2 = arith.constant 0 : i32
    return %c0_i32, %c0_i32_0, %c0_i32_1 : i32, i32, i32
  }
  func.func @transform_11(%arg0: i32) -> (i32, i32, i32) {
    %c0_i32 = arith.constant 0 : i32
    %c0_i32_0 = arith.constant 0 : i32
    %c0_i32_1 = arith.constant 0 : i32
    %c0_i32_2 = arith.constant 0 : i32
    return %c0_i32, %c0_i32_0, %c0_i32_1 : i32, i32, i32
  }
  func.func @transform_12(%arg0: i32) -> (i32, i32, i32) {
    %c0_i32 = arith.constant 0 : i32
    %c0_i32_0 = arith.constant 0 : i32
    %c0_i32_1 = arith.constant 0 : i32
    %c0_i32_2 = arith.constant 0 : i32
    return %c0_i32, %c0_i32_0, %c0_i32_1 : i32, i32, i32
  }
  func.func @transform_13(%arg0: i32) -> (i32, i32, i32) {
    %c0_i32 = arith.constant 0 : i32
    %c0_i32_0 = arith.constant 0 : i32
    %c0_i32_1 = arith.constant 0 : i32
    %c0_i32_2 = arith.constant 0 : i32
    return %c0_i32, %c0_i32_0, %c0_i32_1 : i32, i32, i32
  }
  func.func @transform_14(%arg0: i32) -> (i32, i32, i32) {
    %c0_i32 = arith.constant 0 : i32
    %c0_i32_0 = arith.constant 0 : i32
    %c0_i32_1 = arith.constant 0 : i32
    %c0_i32_2 = arith.constant 0 : i32
    return %c0_i32, %c0_i32_0, %c0_i32_1 : i32, i32, i32
  }
  func.func @transform_15(%arg0: i32) -> (i32, i32, i32) {
    %c0_i32 = arith.constant 0 : i32
    %c0_i32_0 = arith.constant 0 : i32
    %c0_i32_1 = arith.constant 0 : i32
    %c0_i32_2 = arith.constant 0 : i32
    return %c0_i32, %c0_i32_0, %c0_i32_1 : i32, i32, i32
  }
  func.func @transform_16(%arg0: i32) -> (i32, i32, i32) {
    %c0_i32 = arith.constant 0 : i32
    %c0_i32_0 = arith.constant 0 : i32
    %c0_i32_1 = arith.constant 0 : i32
    %c0_i32_2 = arith.constant 0 : i32
    return %c0_i32, %c0_i32_0, %c0_i32_1 : i32, i32, i32
  }
  func.func @transform_17(%arg0: i32) -> (i32, i32, i32) {
    %c0_i32 = arith.constant 0 : i32
    %c0_i32_0 = arith.constant 0 : i32
    %c0_i32_1 = arith.constant 0 : i32
    %c0_i32_2 = arith.constant 0 : i32
    return %c0_i32, %c0_i32_0, %c0_i32_1 : i32, i32, i32
  }
  func.func @transform_18(%arg0: i32) -> (i32, i32) {
    %c0_i32 = arith.constant 0 : i32
    %c0_i32_0 = arith.constant 0 : i32
    %c0_i32_1 = arith.constant 0 : i32
    return %c0_i32, %c0_i32_0 : i32, i32
  }
  func.func @transform_19(%arg0: i32) -> (i32, i32) {
    %c0_i32 = arith.constant 0 : i32
    %c0_i32_0 = arith.constant 0 : i32
    %c0_i32_1 = arith.constant 0 : i32
    return %c0_i32, %c0_i32_0 : i32, i32
  }
  func.func @transform_20(%arg0: i32) -> (i32, i32) {
    %c0_i32 = arith.constant 0 : i32
    %c0_i32_0 = arith.constant 0 : i32
    %c0_i32_1 = arith.constant 0 : i32
    return %c0_i32, %c0_i32_0 : i32, i32
  }
}

</mosaic_0001>

<bundles_post_ra>
// kernel: bert_classifier_forward.1
= control target key start
LH: loop header
LB: loop body
LE: loop exit
PB: predicated region body
PF: predicated region fallthrough
CT: control target
= control target key end

     0   :  { %s4120_s0 = inlined_call_operand.vmem [shape: s32[16,1], index: 0, kind: input, shape index: {}]   ;;  %s4121_s1 = inlined_call_operand.vmem [shape: f32[2,8], index: 1, kind: input, shape index: {}]   ;;  %s4122_s2 = inlined_call_operand.vmem [shape: f32[128,64], index: 2, kind: input, shape index: {}]   ;;  %s4123_s3 = inlined_call_operand.vmem [shape: f32[8,64], index: 3, kind: input, shape index: {}]   ;;  %s4124_s4 = inlined_call_operand.vmem [shape: f32[1,64], index: 4, kind: input, shape index: {}]   ;;  %s4125_s5 = inlined_call_operand.vmem [shape: f32[1,64], index: 5, kind: input, shape index: {}]   ;;  %s4126_s6 = inlined_call_operand.vmem [shape: f32[2,64,192], index: 6, kind: input, shape index: {}]   ;;  %s4127_s7 = inlined_call_operand.vmem [shape: f32[2,1,192], index: 7, kind: input, shape index: {}]   ;;  %s4128_s8 = inlined_call_operand.vmem [shape: f32[2,64,64], index: 8, kind: input, shape index: {}]   ;;  %s4129_s9 = inlined_call_operand.vmem [shape: f32[2,1,64], index: 9, kind: input, shape index: {}]   ;;  %s4130_s10 = inlined_call_operand.vmem [shape: f32[2,1,64], index: 10, kind: input, shape index: {}]   ;;  %s4131_s11 = inlined_call_operand.vmem [shape: f32[2,1,64], index: 11, kind: input, shape index: {}]   ;;  %s4132_s12 = inlined_call_operand.hbm [shape: f32[2,64,128], index: 12, kind: input, shape index: {}]   ;;  %s4133_s13 = inlined_call_operand.vmem [shape: f32[2,1,128], index: 13, kind: input, shape index: {}]   ;;  %s4134_s14 = inlined_call_operand.vmem [shape: f32[2,128,64], index: 14, kind: input, shape index: {}]   ;;  %s4135_s15 = inlined_call_operand.vmem [shape: f32[2,1,64], index: 15, kind: input, shape index: {}]   ;;  %s4136_s16 = inlined_call_operand.vmem [shape: f32[2,1,64], index: 16, kind: input, shape index: {}]   ;;  %s4137_s17 = inlined_call_operand.vmem [shape: f32[2,1,64], index: 17, kind: input, shape index: {}]   ;;  %s4138_s18 = inlined_call_operand.vmem [shape: f32[64,128], index: 18, kind: input, shape index: {}]   ;;  %s4139_s19 = inlined_call_operand.vmem [shape: f32[1,128], index: 19, kind: input, shape index: {}]   ;;  %s4140_s20 = inlined_call_operand.hbm [shape: f32[2,128], index: 20, kind: output, shape index: {}]  }
   0x1   :  { %4143 = sst [smem:[#allocation8_spill]] %s4120_s0 }
   0x2   :  { %4144 = sst [smem:[#allocation9_spill]] %s4121_s1 }
   0x3   :  { %4145 = sst [smem:[#allocation10_spill]] %s4122_s2 }
   0x4   :  { %4146 = sst [smem:[#allocation11_spill]] %s4123_s3 }
   0x5   :  { %4147 = sst [smem:[#allocation12_spill]] %s4124_s4 }
   0x6   :  { %25 = vsyncpa [#allocation3], 0 }
   0x7   :  { %26 = vsyncpa [#allocation4], 0  ;;  %s3371_s1 = smov [#allocation2]  }
   0x8   :  { %s56_s22 = sshll.u32 %s3371_s1, 4  ;;  %s57_s22 = int_to_ptr.vmem [resolvable:$true] %s56_s22 }
   0x9   :  { %s3335_s23 = scalar_lea.vmem %s57_s22, 2048  ;;  %p3340_p1 = scmp.lt.s32.totalorder %s57_s22, %s57_s22 }
   0xa   :  { %p3336_p0 = scmp.ne.s32.totalorder %s57_s22, %s3335_s23  ;;  %p3341_p2 = scmp.lt.s32.totalorder %s3335_s23, %s3335_s23 }
   0xc   :  { %p3342_p3 = por %p3341_p2, %p3340_p1 }
   0xe   :  { %p3343_p4 = pnand %p3342_p3, %p3336_p0 }
  0x10   :  { %3346 = shalt.err (!%p3343_p4)
}
  0x11   :  { %s3372_s24 = smov 128   ;;  %s3373_s2 = smov 8  }
  0x12   :  { %62 = dma.hbm_to_vmem [thread:$0]  %s4132_s12, 2048, %s57_s22, [#allocation3], %s3372_s24, %s3372_s24, %s3373_s2  }
  0x13   :  { %3367 = dma.done.wait [#allocation3], 2048  }
  0x14   :  { %3368 = vsyncadd [#allocation3], 4294965248  ;;  %v3374_v0 = vmov 0   ;;  %s4148_s28 = sld [smem:[#allocation8_spill]]  ;;  %v82_v19 = vlaneseq  ;;  %v3375_v22 = vmov 1.0   ;;  %vm190_vm2 = vcmask 523264  }
  0x15   :  { %3266 = vset.pattern.permute.xlu0 %v3374_v0  ;;  %s4149_s30 = sld [smem:[#allocation10_spill]]  ;;  %v252_v41 = vld [vmem:[%s4126_s6 + $0x78] sm:$0xff]  ;;  %v251_v42 = vld [vmem:[%s4126_s6 + $0x70] sm:$0xff]  ;;  %v250_v43 = vld [vmem:[%s4126_s6 + $0x68] sm:$0xff]  ;;  %v3376_v46 = vmov 0.0   ;;  %vm3377_vm3 = vmmov 0  }
  0x16   :  { %v83_v20 = vand.u32 127, %v82_v19  ;;  %s4150_s22 = sld [smem:[#allocation11_spill]]  ;;  %287 = vmatprep.subr.mxu1 %v252_v41  ;;  %v249_v44 = vld [vmem:[%s4126_s6 + $0x60] sm:$0xff]  ;;  %v248_v45 = vld [vmem:[%s4126_s6 + $0x58] sm:$0xff]  ;;  %335 = vmatprep.mubr.f32.mxu1 %v3376_v46  ;;  %v247_v47 = vld [vmem:[%s4126_s6 + $0x50] sm:$0xff]  ;;  %s3378_s26 = smov 64  }
  0x17   :  { %288 = vmatpush1.msra.mxu1 %v251_v42  ;;  %v246_v48 = vld [vmem:[%s4126_s6 + $0x48] sm:$0xff]  ;;  %v245_v49 = vld [vmem:[%s4126_s6 + $0x40] sm:$0xff]  ;;  %v244_v50 = vld [vmem:[%s4126_s6 + $0x38] sm:$0xff]  ;;  %s4151_s24 = sld [smem:[#allocation12_spill]]  ;;  %vm351_vm4 = vcmask 261120   ;;  %vm432_vm5 = vcmask 64512  }
  0x18   :  { %289 = vmatprep.subr.mxu1 %v250_v43  ;;  %v243_v51 = vld [vmem:[%s4126_s6 + $0x30] sm:$0xff]  ;;  %v242_v52 = vld [vmem:[%s4126_s6 + $0x28] sm:$0xff]  ;;  %v241_v53 = vld [vmem:[%s4126_s6 + $0x20] sm:$0xff]  ;;  %s4152_s4 = sld [smem:[#allocation9_spill]]  ;;  %s3379_s29 = smov 32   ;;  %vm2628_vm6 = vcmask 1040384  }
  0x19   :  { %290 = vmatpush1.msra.mxu1 %v249_v44  ;;  %v240_v54 = vld [vmem:[%s4126_s6 + $0x18] sm:$0xff]  ;;  %v239_v55 = vld [vmem:[%s4126_s6 + $0x10] sm:$0xff]  ;;  %v238_v56 = vld [vmem:[%s4126_s6 + $0x8] sm:$0xff]  ;;  %s3380_s0 = smov 96  }
  0x1a   :  { %v80_v1 = vld [vmem:[%s4148_s28] sm:$0xff]  ;;  %v81_v4 = vld [vmem:[%s4148_s28 + $0x8] sm:$0xff]  ;;  %291 = vmatprep.subr.mxu1 %v248_v45 }
  0x1b   :  { %v111_v2 = vld [vmem:[%s4149_s30 + $0x78] sm:$0xff]  ;;  %85 = vperm.xlu0 %3266, %v80_v1   ;;  %v110_v3 = vld [vmem:[%s4149_s30 + $0x70] sm:$0xff]  ;;  %v109_v5 = vld [vmem:[%s4149_s30 + $0x68] sm:$0xff]  ;;  %292 = vmatpush1.msra.mxu1 %v247_v47 }
  0x1c   :  { %2975 = vmatprep.subr.mxu0 %v111_v2  ;;  %v108_v6 = vld [vmem:[%s4149_s30 + $0x60] sm:$0xff]  ;;  %v107_v7 = vld [vmem:[%s4149_s30 + $0x58] sm:$0xff]  ;;  %v106_v8 = vld [vmem:[%s4149_s30 + $0x50] sm:$0xff]  ;;  %293 = vmatprep.subr.mxu1 %v246_v48 }
  0x1d   :  { %2976 = vmatpush3.msra.mxu0 %v111_v2  ;;  %v105_v9 = vld [vmem:[%s4149_s30 + $0x48] sm:$0xff]  ;;  %v104_v10 = vld [vmem:[%s4149_s30 + $0x40] sm:$0xff]  ;;  %v103_v11 = vld [vmem:[%s4149_s30 + $0x38] sm:$0xff]  ;;  %294 = vmatpush1.msra.mxu1 %v245_v49 }
  0x1e   :  { %2977 = vmatprep.subr.mxu0 %v110_v3  ;;  %v102_v12 = vld [vmem:[%s4149_s30 + $0x30] sm:$0xff]  ;;  %v101_v13 = vld [vmem:[%s4149_s30 + $0x28] sm:$0xff]  ;;  %v100_v14 = vld [vmem:[%s4149_s30 + $0x20] sm:$0xff]  ;;  %295 = vmatprep.subr.mxu1 %v244_v50 }
  0x1f   :  { %2978 = vmatpush3.msra.mxu0 %v110_v3  ;;  %88 = vperm.xlu0 %3266, %v81_v4   ;;  %v99_v15 = vld [vmem:[%s4149_s30 + $0x18] sm:$0xff]  ;;  %v98_v16 = vld [vmem:[%s4149_s30 + $0x10] sm:$0xff]  ;;  %v97_v17 = vld [vmem:[%s4149_s30 + $0x8] sm:$0xff] }
  0x20   :  { %2979 = vmatprep.subr.mxu0 %v109_v5  ;;  %v96_v18 = vld [vmem:[%s4149_s30] sm:$0xff]  ;;  %296 = vmatpush1.msra.mxu1 %v243_v51 }
  0x21   :  { %2980 = vmatpush3.msra.mxu0 %v109_v5  ;;  %v112_v24 = vld [vmem:[%s4150_s22] sm:$0xff]  ;;  %297 = vmatprep.subr.mxu1 %v242_v52 }
  0x22   :  { %2981 = vmatprep.subr.mxu0 %v108_v6  ;;  %298 = vmatpush1.msra.mxu1 %v241_v53  ;;  %v237_v57 = vld [vmem:[%s4126_s6] sm:$0xff] }
  0x23   :  { %2982 = vmatpush3.msra.mxu0 %v108_v6  ;;  %299 = vmatprep.subr.mxu1 %v240_v54  ;;  %v2738_v1 = vld [vmem:[%s4151_s24] ss:$0 sm:$0xff] }
  0x24   :  { %2983 = vmatprep.subr.mxu0 %v107_v7  ;;  %300 = vmatpush1.msra.mxu1 %v239_v55  ;;  %v2739_v3 = vld [vmem:[%s4125_s5] ss:$0 sm:$0xff] }
  0x25   :  { %2984 = vmatpush3.msra.mxu0 %v107_v7  ;;  %301 = vmatprep.subr.mxu1 %v238_v56 }
  0x26   :  { %2985 = vmatprep.subr.mxu0 %v106_v8  ;;  %302 = vmatpush1.msra.mxu1 %v237_v57 }
  0x27   :  { %2986 = vmatpush3.msra.mxu0 %v106_v8  ;;  %3010 = vmatprep.subr.mxu1 %v3376_v46 }
  0x28   :  { %2987 = vmatprep.subr.mxu0 %v105_v9 }
  0x29   :  { %2988 = vmatpush3.msra.mxu0 %v105_v9 }
  0x2a   :  { %2989 = vmatprep.subr.mxu0 %v104_v10 }
  0x2b   :  { %2990 = vmatpush3.msra.mxu0 %v104_v10  ;;  %v256_v10 = vshrl.u32 %v82_v19, 7 }
  0x2c   :  { %2991 = vmatprep.subr.mxu0 %v103_v11 }
  0x2d   :  { %2992 = vmatpush3.msra.mxu0 %v103_v11  ;;  %v3623_v11 = vsub.s32 0, %v256_v10  ;;  %v3632_v19 = vsub.s32 1, %v256_v10 }
  0x2e   :  { %2993 = vmatprep.subr.mxu0 %v102_v12 }
  0x2f   :  { %2994 = vmatpush3.msra.mxu0 %v102_v12  ;;  %v253_v12 = vld [vmem:[%s4127_s7] sm:$0x3] }
  0x30   :  { %2995 = vmatprep.subr.mxu0 %v101_v13 }
  0x31   :  { %2996 = vmatpush3.msra.mxu0 %v101_v13  ;;  %v258_v13 = vrot.slane %v253_v12, %v3623_v11 }
  0x32   :  { %2997 = vmatprep.subr.mxu0 %v100_v14 }
  0x33   :  { %2998 = vmatpush3.msra.mxu0 %v100_v14 }
  0x34   :  { %2999 = vmatprep.subr.mxu0 %v99_v15 }
  0x35   :  { %3000 = vmatpush3.msra.mxu0 %v99_v15 }
  0x36   :  { %3001 = vmatprep.subr.mxu0 %v98_v16 }
  0x37   :  { %3002 = vmatpush3.msra.mxu0 %v98_v16 }
  0x38   :  { %3003 = vmatprep.subr.mxu0 %v97_v17 }
  0x39   :  { %3004 = vmatpush3.msra.mxu0 %v97_v17 }
  0x3a   :  { %3005 = vmatprep.subr.mxu0 %v96_v18 }
  0x3b   :  { %3006 = vmatpush3.msra.mxu0 %v96_v18 }
  0x3c   :  { %3045 = vmatprep.subr.mxu0 %v3376_v46 }
  0x96   :  { %v86_v21 = vpop.permute.xlu0 %85 }
  0x97   :  { %vm90_vm0 = vcmp.eq.s32.totalorder %v83_v20, %v86_v21 }
  0x98   :  { %3007 = vmatprep.mubr.msk.f32.mxu0 %vm90_vm0, %v3375_v22 }
  0x9a   :  { %v89_v23 = vpop.permute.xlu0 %88 }
  0x9b   :  { %vm91_vm1 = vcmp.eq.s32.totalorder %v83_v20, %v89_v23  ;;  %v3635_v20 = vrot.slane %v253_v12, %v3632_v19  ;;  %v234_v23 = vld [vmem:[%s4152_s4] sm:$0x3] }
  0x9c   :  { %3008 = vmatmul.mubr.msk.f32.vlgmr.msra.gmra.mxu0 %vm91_vm1, %v3375_v22 }
  0x9d   :  { %3047 = vmatprep.mubr.msk.f32.mxu0 %vm3377_vm3, %v3376_v46 }
 0x15c   :  { %v3009_v25 = vpop.f32.mrf.mxu0 }
 0x15d   :  { %v185_v26 = vadd.f32 %v3009_v25, %v112_v24 }
 0x15e   :  { %v179_v27 = vpop.f32.mrf.mxu0 }
 0x15f   :  { %v180_v28 = vadd.f32 %v179_v27, %v112_v24  ;;  %v194_v29 = vsel %vm190_vm2, %v185_v26, 0.0  ;;  %v235_v24 = vsub.f32 1.0, %v234_v23 }
 0x160   :  { %195 = vadd.xlane.f32.xlu0 %v194_v29 }
 0x161   :  { %v191_v30 = vsel %vm190_vm2, %v180_v28, 0.0  ;;  %v3647_v25 = vmul.f32 -1e+09, %v235_v24 }
 0x162   :  { %192 = vadd.xlane.f32.xlu1 %v191_v30 }
 0x163   :  { %v3651_v27 = vrot.slane %v3647_v25, %v3623_v11 }
 0x1e9   :  { %v196_v31 = vpop.xlane.xlu0 %195 }
 0x1ea   :  { %v199_v32 = vmul.f32 0.015625, %v196_v31 }
 0x1eb   :  { %v193_v33 = vpop.xlane.xlu1 %192 }
 0x1ec   :  { %v198_v34 = vmul.f32 0.015625, %v193_v33  ;;  %v201_v35 = vsub.f32 %v185_v26, %v199_v32 }
 0x1ee   :  { %v200_v36 = vsub.f32 %v180_v28, %v198_v34  ;;  %v203_v39 = vmul.f32 %v201_v35, %v201_v35 }
 0x1f0   :  { %v202_v37 = vmul.f32 %v200_v36, %v200_v36  ;;  %v207_v40 = vsel %vm190_vm2, %v203_v39, 0.0 }
 0x1f2   :  { %v204_v38 = vsel %vm190_vm2, %v202_v37, 0.0 }
 0x1f3   :  { %205 = vadd.xlane.f32.xlu1 %v204_v38 }
 0x1f7   :  { %208 = vadd.xlane.f32.xlu1 %v207_v40 }
 0x27c   :  { %v206_v58 = vpop.xlane.xlu1 %205 }
 0x27d   :  { %v210_v59 = vmul.f32 0.015625, %v206_v58 }
 0x27f   :  { %v212_v60 = vadd.f32 1e-05, %v210_v59 }
 0x280   :  { %v209_v61 = vpop.xlane.xlu1 %208 }
 0x281   :  { %3267 = vrsqrt.f32 %v212_v60  ;;  %v211_v62 = vmul.f32 0.015625, %v209_v61 }
 0x283   :  { %v213_v63 = vadd.f32 1e-05, %v211_v62 }
 0x285   :  { %3269 = vrsqrt.f32 %v213_v63 }
 0x28e   :  { %v3268_v0 = vpop.eup %3267 }
 0x28f   :  { %v216_v2 = vmul.f32 %v3268_v0, %v200_v36  ;;  %v3688_v0 = vrot.slane %v3647_v25, %v3632_v19 }
 0x291   :  { %v224_v4 = vmul.f32 %v2738_v1, %v216_v2 }
 0x292   :  { %v3270_v5 = vpop.eup %3269 }
 0x293   :  { %v3609_v6 = vadd.f32 %v2739_v3, %v224_v4  ;;  %v217_v7 = vmul.f32 %v3270_v5, %v201_v35 }
 0x295   :  { %2740 = vmatmul.mubr.msk.f32.vlgmr.msra.gmra.mxu1 %vm190_vm2, %v3609_v6  ;;  %v225_v8 = vmul.f32 %v2738_v1, %v217_v7 }
 0x296   :  { %341 = vmatprep.mubr.f32.mxu1 %v3376_v46 }
 0x297   :  { %v3614_v9 = vadd.f32 %v2739_v3, %v225_v8 }
 0x299   :  { %2741 = vmatmul.mubr.msk.f32.gmra.mxu1 %vm190_vm2, %v3614_v9 }
 0x29a   :  { %3012 = vmatprep.mubr.msk.f32.mxu1 %vm3377_vm3, %v3376_v46 }
 0x355   :  { %v337_v14 = vpop.f32.mrf.mxu1 }
 0x356   :  { %v338_v15 = vadd.f32 %v337_v14, %v258_v13 }
 0x357   :  { %v339_v16 = vpop.f32.mrf.mxu1 }
 0x358   :  { %349 = vrot.lane.b32.xlu1 %v338_v15, %s3378_s26  ;;  %v340_v22 = vadd.f32 %v339_v16, %v3635_v20 }
 0x359   :  { %v343_v17 = vpop.f32.mrf.mxu1 }
 0x35a   :  { %v3630_v18 = vadd.f32 %v343_v17, %v258_v13 }
 0x35b   :  { %v345_v26 = vpop.f32.mrf.mxu1 }
 0x35c   :  { %v346_v61 = vadd.f32 %v345_v26, %v3635_v20 }
 0x3ca   :  { %v350_v21 = vpop.permute.xlu1 %349 }
 0x3cb   :  { %3011 = vmatpush3.xpose.msk.msra.mxu1 %vm351_vm4, %v350_v21 }
 0x3cc   :  { %3015 = vmatprep.subr.mxu1 %v3376_v46 }
 0x3ce   :  { %3013 = vmatmul.mubr.msk.f32.vlgmr.msra.gmra.mxu1 %vm351_vm4, %v338_v15 }
 0x3cf   :  { %3016 = vmatpush3.msra.mxu1 %v340_v22  ;;  %3017 = vmatprep.mubr.msk.f32.mxu1 %vm3377_vm3, %v3376_v46 }
 0x3d0   :  { %3020 = vmatprep.subr.mxu1 %v3376_v46 }
 0x48e   :  { %v422_v28 = vpop.f32.mrf.mxu1 }
 0x48f   :  { %v426_v29 = vmul.f32 0.17677669, %v422_v28 }
 0x490   :  { %v3014_v30 = vpop.f32.mrf.mxu1 }
 0x491   :  { %v431_v31 = vadd.f32 %v3651_v27, %v426_v29 }
 0x493   :  { %v433_v32 = vsel %vm432_vm5, %v431_v31, -inf }
 0x494   :  { %434 = vmax.xlane.f32.xlu1 %v433_v32 }
 0x51d   :  { %v435_v33 = vpop.xlane.xlu1 %434 }
 0x51e   :  { %v436_v34 = vsub.f32 %v431_v31, %v435_v33 }
 0x520   :  { %v437_v35 = vmul.f32 1.442695, %v436_v34 }
 0x522   :  { %3271 = vpow2.f32 %v437_v35 }
 0x52f   :  { %v3272_v36 = vpop.eup %3271 }
 0x530   :  { %v439_v37 = vsel %vm432_vm5, %v3272_v36, 0.0 }
 0x531   :  { %440 = vadd.xlane.f32.xlu0 %v439_v37 }
 0x547   :  { %519 = vrot.lane.b32.xlu0 %v338_v15, %s3379_s29 }
 0x54b   :  { %517 = vrot.lane.b32.xlu0 %v338_v15, %s3380_s0 }
 0x5ba   :  { %v441_v38 = vpop.xlane.xlu0 %440 }
 0x5bb   :  { %3273 = vrcp.f32 %v441_v38 }
 0x5be   :  { %v520_v40 = vpop.permute.xlu0 %519 }
 0x5c2   :  { %v518_v42 = vpop.permute.xlu0 %517 }
 0x5c8   :  { %v3274_v39 = vpop.eup %3273 }
 0x5c9   :  { %v443_v41 = vmul.f32 %v3274_v39, %v3272_v36  ;;  %v1037_v39 = vld [vmem:[%s4128_s8 + $0x38] sm:$0xff] }
 0x5cb   :  { %3018 = vmatmul.mubr.msk.f32.vlgmr.msra.gmra.mxu1 %vm432_vm5, %v443_v41  ;;  %v1035_v41 = vld [vmem:[%s4128_s8 + $0x28] sm:$0xff] }
 0x5cc   :  { %3021 = vmatpush3.xpose.msk.msra.mxu1 %vm351_vm4, %v520_v40  ;;  %3022 = vmatprep.mubr.msk.f32.mxu1 %vm3377_vm3, %v3376_v46  ;;  %v1036_v40 = vld [vmem:[%s4128_s8 + $0x30] sm:$0xff] }
 0x5cd   :  { %3025 = vmatprep.subr.mxu1 %v3376_v46 }
 0x5cf   :  { %3023 = vmatmul.mubr.msk.f32.vlgmr.msra.gmra.mxu1 %vm351_vm4, %v518_v42  ;;  %v1034_v42 = vld [vmem:[%s4128_s8 + $0x20] sm:$0xff] }
 0x5d0   :  { %3027 = vmatprep.mubr.msk.f32.mxu1 %vm3377_vm3, %v3376_v46 }
 0x68b   :  { %v3666_v43 = vpop.f32.mrf.mxu1 }
 0x68d   :  { %v3019_v44 = vpop.f32.mrf.mxu1 }
 0x68e   :  { %v1032_v44 = vld [vmem:[%s4128_s8 + $0x10] sm:$0xff] }
 0x68f   :  { %v591_v45 = vpop.f32.mrf.mxu1 }
 0x690   :  { %v595_v47 = vmul.f32 0.17677669, %v591_v45  ;;  %v1031_v45 = vld [vmem:[%s4128_s8 + $0x8] sm:$0xff] }
 0x691   :  { %v3024_v48 = vpop.f32.mrf.mxu1 }
 0x692   :  { %v596_v49 = vadd.f32 %v595_v47, %v3651_v27  ;;  %v1030_v47 = vld [vmem:[%s4128_s8] sm:$0xff] }
 0x694   :  { %v597_v50 = vsel %vm432_vm5, %v596_v49, -inf }
 0x695   :  { %598 = vmax.xlane.f32.xlu1 %v597_v50 }
 0x6a6   :  { %609 = vrot.lane.b32.xlu1 %v340_v22, %s3380_s0 }
 0x6aa   :  { %691 = vrot.lane.b32.xlu1 %v3630_v18, %s3378_s26 }
 0x71e   :  { %v599_v51 = vpop.xlane.xlu1 %598 }
 0x71f   :  { %v600_v52 = vsub.f32 %v596_v49, %v599_v51 }
 0x721   :  { %v601_v53 = vmul.f32 1.442695, %v600_v52  ;;  %v2754_v52 = vld [vmem:[%s4129_s9] ss:$0 sm:$0xff] }
 0x722   :  { %v610_v54 = vpop.permute.xlu1 %609 }
 0x723   :  { %3275 = vpow2.f32 %v601_v53  ;;  %3026 = vmatpush3.msra.mxu1 %v610_v54 }
 0x724   :  { %3030 = vmatprep.subr.mxu1 %v3376_v46 }
 0x726   :  { %v692_v60 = vpop.permute.xlu1 %691 }
 0x730   :  { %v3276_v55 = vpop.eup %3275 }
 0x731   :  { %v603_v56 = vsel %vm432_vm5, %v3276_v55, 0.0 }
 0x732   :  { %604 = vadd.xlane.f32.xlu0 %v603_v56 }
 0x7bb   :  { %v605_v57 = vpop.xlane.xlu0 %604 }
 0x7bc   :  { %3277 = vrcp.f32 %v605_v57 }
 0x7c9   :  { %v3278_v58 = vpop.eup %3277 }
 0x7ca   :  { %v607_v59 = vmul.f32 %v3278_v58, %v3276_v55 }
 0x7cc   :  { %3028 = vmatmul.mubr.msk.f32.vlgmr.msra.gmra.mxu1 %vm432_vm5, %v607_v59 }
 0x7cd   :  { %3031 = vmatpush3.xpose.msk.msra.mxu1 %vm351_vm4, %v692_v60  ;;  %3032 = vmatprep.mubr.msk.f32.mxu1 %vm3377_vm3, %v3376_v46 }
 0x7ce   :  { %3035 = vmatprep.subr.mxu1 %v3376_v46 }
 0x7d0   :  { %3033 = vmatmul.mubr.msk.f32.vlgmr.msra.gmra.mxu1 %vm351_vm4, %v3630_v18 }
 0x7d1   :  { %3036 = vmatpush3.msra.mxu1 %v346_v61  ;;  %3037 = vmatprep.mubr.msk.f32.mxu1 %vm3377_vm3, %v3376_v46 }
 0x7d2   :  { %3040 = vmatprep.subr.mxu1 %v3376_v46 }
 0x88c   :  { %v681_v62 = vpop.f32.mrf.mxu1 }
 0x88e   :  { %v3029_v63 = vpop.f32.mrf.mxu1 }
 0x890   :  { %v763_v1 = vpop.f32.mrf.mxu1 }
 0x891   :  { %v767_v2 = vmul.f32 0.17677669, %v763_v1 }
 0x892   :  { %v3034_v3 = vpop.f32.mrf.mxu1 }
 0x893   :  { %v772_v4 = vadd.f32 %v3688_v0, %v767_v2 }
 0x895   :  { %v773_v5 = vsel %vm432_vm5, %v772_v4, -inf }
 0x896   :  { %774 = vmax.xlane.f32.xlu1 %v773_v5 }
 0x91f   :  { %v775_v7 = vpop.xlane.xlu1 %774 }
 0x920   :  { %v776_v8 = vsub.f32 %v772_v4, %v775_v7 }
 0x922   :  { %v777_v10 = vmul.f32 1.442695, %v776_v8  ;;  %v1179_v8 = vld [vmem:[#allocation2 + $0x38] sm:$0xff] }
 0x924   :  { %3279 = vpow2.f32 %v777_v10  ;;  %v1177_v10 = vld [vmem:[#allocation2 + $0x28] sm:$0xff] }
 0x931   :  { %v3280_v12 = vpop.eup %3279 }
 0x932   :  { %v779_v13 = vsel %vm432_vm5, %v3280_v12, 0.0 }
 0x933   :  { %780 = vadd.xlane.f32.xlu0 %v779_v13  ;;  %v1175_v13 = vld [vmem:[#allocation2 + $0x18] sm:$0xff] }
 0x949   :  { %859 = vrot.lane.b32.xlu0 %v3630_v18, %s3379_s29 }
 0x94d   :  { %857 = vrot.lane.b32.xlu0 %v3630_v18, %s3380_s0 }
 0x9bc   :  { %v781_v14 = vpop.xlane.xlu0 %780 }
 0x9bd   :  { %3281 = vrcp.f32 %v781_v14  ;;  %v1174_v14 = vld [vmem:[#allocation2 + $0x10] sm:$0xff] }
 0x9c0   :  { %v860_v16 = vpop.permute.xlu0 %859 }
 0x9c4   :  { %v858_v20 = vpop.permute.xlu0 %857 }
 0x9ca   :  { %v3282_v15 = vpop.eup %3281 }
 0x9cb   :  { %v783_v17 = vmul.f32 %v3282_v15, %v3280_v12  ;;  %v1176_v12 = vld [vmem:[#allocation2 + $0x20] sm:$0xff]  ;;  %v1173_v15 = vld [vmem:[#allocation2 + $0x8] sm:$0xff] }
 0x9cd   :  { %3038 = vmatmul.mubr.msk.f32.vlgmr.msra.gmra.mxu1 %vm432_vm5, %v783_v17 }
 0x9ce   :  { %3041 = vmatpush3.xpose.msk.msra.mxu1 %vm351_vm4, %v860_v16  ;;  %3042 = vmatprep.mubr.msk.f32.mxu1 %vm3377_vm3, %v3376_v46  ;;  %v1172_v16 = vld [vmem:[#allocation2] sm:$0xff] }
 0x9cf   :  { %3050 = vmatprep.subr.mxu1 %v1037_v39 }
 0x9d1   :  { %3043 = vmatmul.mubr.msk.f32.vlgmr.msra.gmra.mxu1 %vm351_vm4, %v858_v20 }
 0x9d2   :  { %3051 = vmatpush3.msra.mxu1 %v1037_v39  ;;  %v1297_v39 = vld [vmem:[%s4134_s14 + $0x58] sm:$0xff] }
 0x9d3   :  { %3052 = vmatprep.subr.mxu1 %v1036_v40 }
 0x9d4   :  { %3053 = vmatpush3.msra.mxu1 %v1036_v40  ;;  %v1296_v40 = vld [vmem:[%s4134_s14 + $0x50] sm:$0xff] }
 0x9d5   :  { %3054 = vmatprep.subr.mxu1 %v1035_v41 }
 0x9d6   :  { %3055 = vmatpush3.msra.mxu1 %v1035_v41  ;;  %v1295_v41 = vld [vmem:[%s4134_s14 + $0x48] sm:$0xff] }
 0x9d7   :  { %3056 = vmatprep.subr.mxu1 %v1034_v42 }
 0x9d8   :  { %3057 = vmatpush3.msra.mxu1 %v1034_v42  ;;  %v1294_v42 = vld [vmem:[%s4134_s14 + $0x40] sm:$0xff] }
 0xa8d   :  { %v853_v21 = vpop.f32.mrf.mxu1 }
 0xa8f   :  { %v3039_v22 = vpop.f32.mrf.mxu1 }
 0xa91   :  { %v931_v23 = vpop.f32.mrf.mxu1 }
 0xa92   :  { %v935_v24 = vmul.f32 0.17677669, %v931_v23 }
 0xa93   :  { %v3044_v18 = vpop.f32.mrf.mxu1 }
 0xa94   :  { %v936_v25 = vadd.f32 %v935_v24, %v3688_v0 }
 0xa96   :  { %v937_v26 = vsel %vm432_vm5, %v936_v25, -inf }
 0xa97   :  { %938 = vmax.xlane.f32.xlu1 %v937_v26 }
 0xaa8   :  { %949 = vrot.lane.b32.xlu1 %v346_v61, %s3380_s0 }
 0xaac   :  { %686 = vrot.lane.b32.xlu1 %v681_v62, %s3379_s29 }
 0xb20   :  { %v939_v28 = vpop.xlane.xlu1 %938 }
 0xb21   :  { %v940_v29 = vsub.f32 %v936_v25, %v939_v28  ;;  %v2757_v25 = vld [vmem:[%s4130_s10] ss:$0 sm:$0xff] }
 0xb22   :  { %v2758_v28 = vld [vmem:[%s4131_s11] ss:$0 sm:$0xff] }
 0xb23   :  { %v941_v30 = vmul.f32 1.442695, %v940_v29 }
 0xb24   :  { %v950_v31 = vpop.permute.xlu1 %949 }
 0xb25   :  { %3283 = vpow2.f32 %v941_v30  ;;  %3046 = vmatpush3.msra.mxu0 %v950_v31 }
 0xb26   :  { %3069 = vmatprep.subr.mxu0 %v1179_v8 }
 0xb28   :  { %v687_v32 = vpop.permute.xlu1 %686 }
 0xb29   :  { %v689_v33 = vsel %vm351_vm4, %v3666_v43, %v687_v32  ;;  %v1033_v43 = vld [vmem:[%s4128_s8 + $0x18] sm:$0xff] }
 0xb2a   :  { %3066 = vmatprep.mubr.msk.f32.mxu1 %vm190_vm2, %v689_v33  ;;  %3058 = vmatprep.subr.mxu1 %v1033_v43 }
 0xb2b   :  { %3059 = vmatpush3.msra.mxu1 %v1033_v43  ;;  %v1293_v43 = vld [vmem:[%s4134_s14 + $0x38] sm:$0xff] }
 0xb2c   :  { %3060 = vmatprep.subr.mxu1 %v1032_v44 }
 0xb2d   :  { %3061 = vmatpush3.msra.mxu1 %v1032_v44  ;;  %v1292_v44 = vld [vmem:[%s4134_s14 + $0x30] sm:$0xff] }
 0xb2e   :  { %3062 = vmatprep.subr.mxu1 %v1031_v45 }
 0xb2f   :  { %3063 = vmatpush3.msra.mxu1 %v1031_v45  ;;  %v1291_v45 = vld [vmem:[%s4134_s14 + $0x28] sm:$0xff] }
 0xb30   :  { %3064 = vmatprep.subr.mxu1 %v1030_v47 }
 0xb31   :  { %3065 = vmatpush3.msra.mxu1 %v1030_v47  ;;  %v1290_v47 = vld [vmem:[%s4134_s14 + $0x20] sm:$0xff] }
 0xb32   :  { %v3284_v34 = vpop.eup %3283 }
 0xb33   :  { %v943_v35 = vsel %vm432_vm5, %v3284_v34, 0.0 }
 0xb34   :  { %944 = vadd.xlane.f32.xlu0 %v943_v35  ;;  %v1301_v35 = vld [vmem:[%s4134_s14 + $0x78] sm:$0xff] }
 0xb35   :  { %3088 = vmatprep.subr.mxu1 %v1301_v35 }
 0xbbd   :  { %v945_v36 = vpop.xlane.xlu0 %944 }
 0xbbe   :  { %3285 = vrcp.f32 %v945_v36  ;;  %v1300_v36 = vld [vmem:[%s4134_s14 + $0x70] sm:$0xff] }
 0xbcb   :  { %v3286_v37 = vpop.eup %3285 }
 0xbcc   :  { %v947_v38 = vmul.f32 %v3286_v37, %v3284_v34  ;;  %v1299_v37 = vld [vmem:[%s4134_s14 + $0x68] sm:$0xff] }
 0xbce   :  { %3048 = vmatmul.mubr.msk.f32.vlgmr.msra.gmra.mxu0 %vm432_vm5, %v947_v38  ;;  %v1298_v38 = vld [vmem:[%s4134_s14 + $0x60] sm:$0xff] }
 0xbcf   :  { %3070 = vmatpush3.msra.mxu0 %v1179_v8 }
 0xc8e   :  { %v1021_v48 = vpop.f32.mrf.mxu0 }
 0xc8f   :  { %1026 = vrot.lane.b32.xlu1 %v1021_v48, %s3379_s29  ;;  %v1289_v48 = vld [vmem:[%s4134_s14 + $0x18] sm:$0xff] }
 0xc90   :  { %v3049_v49 = vpop.f32.mrf.mxu0 }
 0xc91   :  { %v1288_v49 = vld [vmem:[%s4134_s14 + $0x10] sm:$0xff] }
 0xd01   :  { %v1027_v50 = vpop.permute.xlu1 %1026 }
 0xd02   :  { %v1029_v51 = vsel %vm351_vm4, %v853_v21, %v1027_v50  ;;  %v1287_v50 = vld [vmem:[%s4134_s14 + $0x8] sm:$0xff] }
 0xd03   :  { %3067 = vmatmul.mubr.msk.f32.vlgmr.msra.gmra.mxu1 %vm190_vm2, %v1029_v51  ;;  %v1286_v51 = vld [vmem:[%s4134_s14] sm:$0xff] }
 0xd04   :  { %3089 = vmatpush3.msra.mxu1 %v1301_v35  ;;  %v2774_v35 = vld [vmem:[%s4126_s6 + $0xc8] sm:$0xff] }
 0xd05   :  { %3090 = vmatprep.subr.mxu1 %v1300_v36 }
 0xd06   :  { %3091 = vmatpush3.msra.mxu1 %v1300_v36  ;;  %v2773_v36 = vld [vmem:[%s4126_s6 + $0xc0] sm:$0xff] }
 0xd07   :  { %3092 = vmatprep.subr.mxu1 %v1299_v37 }
 0xd08   :  { %3093 = vmatpush3.msra.mxu1 %v1299_v37  ;;  %v2772_v37 = vld [vmem:[%s4126_s6 + $0xb8] sm:$0xff] }
 0xd09   :  { %3094 = vmatprep.subr.mxu1 %v1298_v38 }
 0xd0a   :  { %3095 = vmatpush3.msra.mxu1 %v1298_v38  ;;  %v2771_v38 = vld [vmem:[%s4126_s6 + $0xb0] sm:$0xff] }
 0xd0b   :  { %3096 = vmatprep.subr.mxu1 %v1297_v39 }
 0xd0c   :  { %3097 = vmatpush3.msra.mxu1 %v1297_v39  ;;  %v2770_v39 = vld [vmem:[%s4126_s6 + $0xa8] sm:$0xff] }
 0xd0d   :  { %3098 = vmatprep.subr.mxu1 %v1296_v40 }
 0xd0e   :  { %3099 = vmatpush3.msra.mxu1 %v1296_v40  ;;  %v2769_v40 = vld [vmem:[%s4126_s6 + $0xa0] sm:$0xff] }
 0xd0f   :  { %3100 = vmatprep.subr.mxu1 %v1295_v41 }
 0xd10   :  { %3101 = vmatpush3.msra.mxu1 %v1295_v41  ;;  %v2768_v41 = vld [vmem:[%s4126_s6 + $0x98] sm:$0xff] }
 0xd11   :  { %3102 = vmatprep.subr.mxu1 %v1294_v42 }
 0xd12   :  { %3103 = vmatpush3.msra.mxu1 %v1294_v42  ;;  %v2767_v42 = vld [vmem:[%s4126_s6 + $0x90] sm:$0xff] }
 0xd13   :  { %3104 = vmatprep.subr.mxu1 %v1293_v43 }
 0xd14   :  { %3105 = vmatpush3.msra.mxu1 %v1293_v43  ;;  %v2766_v43 = vld [vmem:[%s4126_s6 + $0x88] sm:$0xff] }
 0xd15   :  { %3106 = vmatprep.subr.mxu1 %v1292_v44 }
 0xd16   :  { %3107 = vmatpush3.msra.mxu1 %v1292_v44  ;;  %v2765_v44 = vld [vmem:[%s4126_s6 + $0x80] sm:$0xff] }
 0xd17   :  { %3108 = vmatprep.subr.mxu1 %v1291_v45 }
 0xd18   :  { %3109 = vmatpush3.msra.mxu1 %v1291_v45 }
 0xd19   :  { %3110 = vmatprep.subr.mxu1 %v1290_v47 }
 0xd1a   :  { %3111 = vmatpush3.msra.mxu1 %v1290_v47 }
 0xd1b   :  { %3112 = vmatprep.subr.mxu1 %v1289_v48 }
 0xd1c   :  { %3113 = vmatpush3.msra.mxu1 %v1289_v48 }
 0xd1d   :  { %3114 = vmatprep.subr.mxu1 %v1288_v49 }
 0xd1e   :  { %3115 = vmatpush3.msra.mxu1 %v1288_v49 }
 0xd1f   :  { %3116 = vmatprep.subr.mxu1 %v1287_v50 }
 0xd20   :  { %3117 = vmatpush3.msra.mxu1 %v1287_v50 }
 0xd21   :  { %3118 = vmatprep.subr.mxu1 %v1286_v51 }
 0xd22   :  { %3119 = vmatpush3.msra.mxu1 %v1286_v51 }
 0xd23   :  { %3138 = vmatprep.subr.mxu1 %v3376_v46 }
 0xdc3   :  { %v3068_v53 = vpop.f32.mrf.mxu1 }
 0xdc4   :  { %v1123_v54 = vadd.f32 %v3068_v53, %v2754_v52 }
 0xdc5   :  { %v1117_v55 = vpop.f32.mrf.mxu1 }
 0xdc6   :  { %v1118_v56 = vadd.f32 %v2754_v52, %v1117_v55  ;;  %v1127_v57 = vadd.f32 %v1123_v54, %v3614_v9  ;;  %v2759_v52 = vld [vmem:[%s4133_s13] ss:$0 sm:$0xff] }
 0xdc8   :  { %v1133_v58 = vsel %vm190_vm2, %v1127_v57, 0.0  ;;  %v1126_v59 = vadd.f32 %v1118_v56, %v3609_v6  ;;  %v1178_v6 = vld [vmem:[#allocation2 + $0x30] sm:$0xff] }
 0xdc9   :  { %1134 = vadd.xlane.f32.xlu0 %v1133_v58  ;;  %3071 = vmatprep.subr.mxu0 %v1178_v6 }
 0xdca   :  { %v1130_v60 = vsel %vm190_vm2, %v1126_v59, 0.0  ;;  %3072 = vmatpush3.msra.mxu0 %v1178_v6 }
 0xdcb   :  { %1131 = vadd.xlane.f32.xlu1 %v1130_v60  ;;  %3073 = vmatprep.subr.mxu0 %v1177_v10 }
 0xdcc   :  { %3074 = vmatpush3.msra.mxu0 %v1177_v10 }
 0xdcd   :  { %3075 = vmatprep.subr.mxu0 %v1176_v12 }
 0xdce   :  { %3076 = vmatpush3.msra.mxu0 %v1176_v12 }
 0xdcf   :  { %3077 = vmatprep.subr.mxu0 %v1175_v13 }
 0xdd0   :  { %3078 = vmatpush3.msra.mxu0 %v1175_v13  ;;  %v2762_v13 = vld [vmem:[%s4135_s15] ss:$0 sm:$0xff] }
 0xdd1   :  { %3079 = vmatprep.subr.mxu0 %v1174_v14 }
 0xdd2   :  { %3080 = vmatpush3.msra.mxu0 %v1174_v14 }
 0xdd3   :  { %3081 = vmatprep.subr.mxu0 %v1173_v15 }
 0xdd4   :  { %3082 = vmatpush3.msra.mxu0 %v1173_v15 }
 0xdd5   :  { %3083 = vmatprep.subr.mxu0 %v1172_v16 }
 0xdd6   :  { %3084 = vmatpush3.msra.mxu0 %v1172_v16 }
 0xe52   :  { %v1135_v61 = vpop.xlane.xlu0 %1134 }
 0xe53   :  { %v1137_v62 = vmul.f32 0.015625, %v1135_v61 }
 0xe54   :  { %v1132_v63 = vpop.xlane.xlu1 %1131 }
 0xe55   :  { %v1136_v1 = vmul.f32 0.015625, %v1132_v63  ;;  %v1139_v2 = vsub.f32 %v1127_v57, %v1137_v62 }
 0xe57   :  { %v1138_v3 = vsub.f32 %v1126_v59, %v1136_v1  ;;  %v1141_v7 = vmul.f32 %v1139_v2, %v1139_v2 }
 0xe59   :  { %v1140_v4 = vmul.f32 %v1138_v3, %v1138_v3  ;;  %v1145_v9 = vsel %vm190_vm2, %v1141_v7, 0.0 }
 0xe5b   :  { %v1142_v5 = vsel %vm190_vm2, %v1140_v4, 0.0 }
 0xe5c   :  { %1143 = vadd.xlane.f32.xlu0 %v1142_v5 }
 0xe60   :  { %1146 = vadd.xlane.f32.xlu0 %v1145_v9 }
 0xee5   :  { %v1144_v17 = vpop.xlane.xlu0 %1143 }
 0xee6   :  { %v1148_v20 = vmul.f32 0.015625, %v1144_v17 }
 0xee8   :  { %v1150_v21 = vadd.f32 1e-05, %v1148_v20 }
 0xee9   :  { %v1147_v22 = vpop.xlane.xlu0 %1146 }
 0xeea   :  { %3287 = vrsqrt.f32 %v1150_v21  ;;  %v1149_v23 = vmul.f32 0.015625, %v1147_v22 }
 0xeec   :  { %v1151_v24 = vadd.f32 1e-05, %v1149_v23 }
 0xeee   :  { %3289 = vrsqrt.f32 %v1151_v24 }
 0xef7   :  { %v3288_v18 = vpop.eup %3287 }
 0xef8   :  { %v1154_v26 = vmul.f32 %v3288_v18, %v1138_v3 }
 0xefa   :  { %v1162_v29 = vmul.f32 %v2757_v25, %v1154_v26 }
 0xefb   :  { %v3290_v30 = vpop.eup %3289 }
 0xefc   :  { %v1155_v31 = vmul.f32 %v3290_v30, %v1139_v2  ;;  %v3753_v32 = vadd.f32 %v2758_v28, %v1162_v29  ;;  %v2780_v29 = vld [vmem:[%s4126_s6 + $0xf8] sm:$0xff]  ;;  %v2779_v30 = vld [vmem:[%s4126_s6 + $0xf0] sm:$0xff] }
 0xefd   :  { %1482 = vmatprep.subr.mxu0 %v2780_v29 }
 0xefe   :  { %v1163_v33 = vmul.f32 %v2757_v25, %v1155_v31  ;;  %3085 = vmatprep.mubr.msk.f32.mxu0 %vm190_vm2, %v3753_v32  ;;  %v2778_v31 = vld [vmem:[%s4126_s6 + $0xe8] sm:$0xff] }
 0xf00   :  { %v3757_v34 = vadd.f32 %v2758_v28, %v1163_v33  ;;  %v2776_v33 = vld [vmem:[%s4126_s6 + $0xd8] sm:$0xff] }
 0xf02   :  { %3086 = vmatmul.mubr.msk.f32.vlgmr.msra.gmra.mxu0 %vm190_vm2, %v3757_v34 }
 0xf03   :  { %1530 = vmatprep.mubr.f32.mxu0 %v3376_v46  ;;  %1483 = vmatpush1.msra.mxu0 %v2779_v30 }
 0xf04   :  { %1484 = vmatprep.subr.mxu0 %v2778_v31 }
 0xfc2   :  { %v3087_v53 = vpop.f32.mrf.mxu0 }
 0xfc3   :  { %v1265_v54 = vadd.f32 %v3087_v53, %v2759_v52 }
 0xfc4   :  { %v1259_v55 = vpop.f32.mrf.mxu0 }
 0xfc5   :  { %v1271_v56 = vmul.f32 0.044715, %v1265_v54  ;;  %v1260_v57 = vadd.f32 %v2759_v52, %v1259_v55  ;;  %v1269_v6 = vmul.f32 0.5, %v1265_v54  ;;  %v2763_v55 = vld [vmem:[%s4136_s16] ss:$0 sm:$0xff] }
 0xfc7   :  { %v1273_v58 = vmul.f32 %v1271_v56, %v1265_v54  ;;  %v1270_v59 = vmul.f32 0.044715, %v1260_v57  ;;  %v1268_v9 = vmul.f32 0.5, %v1260_v57 }
 0xfc9   :  { %v1275_v60 = vmul.f32 %v1273_v58, %v1265_v54  ;;  %v1272_v61 = vmul.f32 %v1270_v59, %v1260_v57 }
 0xfcb   :  { %v1277_v62 = vadd.f32 %v1275_v60, %v1265_v54  ;;  %v1274_v63 = vmul.f32 %v1272_v61, %v1260_v57 }
 0xfcd   :  { %v1276_v1 = vadd.f32 %v1274_v63, %v1260_v57  ;;  %v1279_v2 = vmul.f32 0.7978846, %v1277_v62  ;;  %v2764_v57 = vld [vmem:[%s4137_s17] ss:$0 sm:$0xff] }
 0xfcf   :  { %v1278_v3 = vmul.f32 0.7978846, %v1276_v1  ;;  %3291 = vtanh.f32 %v1279_v2 }
 0xfd1   :  { %3293 = vtanh.f32 %v1278_v3 }
 0xfdc   :  { %v3292_v4 = vpop.eup %3291 }
 0xfdd   :  { %v1283_v7 = vadd.f32 1.0, %v3292_v4  ;;  %v2781_v4 = vld [vmem:[%s4127_s7 + $0x2] sm:$0x3] }
 0xfde   :  { %v3294_v5 = vpop.eup %3293 }
 0xfdf   :  { %v1282_v8 = vadd.f32 1.0, %v3294_v5  ;;  %v1285_v12 = vmul.f32 %v1283_v7, %v1269_v6  ;;  %v1453_v5 = vrot.slane %v2781_v4, %v3623_v11 }
 0xfe1   :  { %v1284_v10 = vmul.f32 %v1282_v8, %v1268_v9  ;;  %v3898_v8 = vrot.slane %v2781_v4, %v3632_v19 }
 0xfe3   :  { %3120 = vmatprep.mubr.f32.mxu1 %v1284_v10 }
 0xfe4   :  { %3121 = vmatmul.mubr.f32.vlgmr.msra.gmra.mxu1 %v1285_v12 }
 0xfe5   :  { %3140 = vmatprep.mubr.msk.f32.mxu1 %vm3377_vm3, %v3376_v46 }
0x10a4   :  { %v3122_v14 = vpop.f32.mrf.mxu1 }
0x10a5   :  { %v1381_v15 = vadd.f32 %v3122_v14, %v2762_v13 }
0x10a6   :  { %v1375_v16 = vpop.f32.mrf.mxu1 }
0x10a7   :  { %v1376_v17 = vadd.f32 %v2762_v13, %v1375_v16  ;;  %v1385_v26 = vadd.f32 %v1381_v15, %v3757_v34  ;;  %v2775_v34 = vld [vmem:[%s4126_s6 + $0xd0] sm:$0xff] }
0x10a9   :  { %v1384_v20 = vadd.f32 %v1376_v17, %v3753_v32  ;;  %v1391_v28 = vsel %vm190_vm2, %v1385_v26, 0.0  ;;  %v2777_v32 = vld [vmem:[%s4126_s6 + $0xe0] sm:$0xff] }
0x10aa   :  { %1485 = vmatpush1.msra.mxu0 %v2777_v32 }
0x10ab   :  { %v1388_v21 = vsel %vm190_vm2, %v1384_v20, 0.0  ;;  %1486 = vmatprep.subr.mxu0 %v2776_v33 }
0x10ac   :  { %1389 = vadd.xlane.f32.xlu0 %v1388_v21  ;;  %1487 = vmatpush1.msra.mxu0 %v2775_v34 }
0x10ad   :  { %1488 = vmatprep.subr.mxu0 %v2774_v35 }
0x10ae   :  { %1489 = vmatpush1.msra.mxu0 %v2773_v36 }
0x10af   :  { %1490 = vmatprep.subr.mxu0 %v2772_v37 }
0x10b0   :  { %1491 = vmatpush1.msra.mxu0 %v2771_v38 }
0x10b1   :  { %1492 = vmatprep.subr.mxu0 %v2770_v39 }
0x10b2   :  { %1493 = vmatpush1.msra.mxu0 %v2769_v40 }
0x10b3   :  { %1494 = vmatprep.subr.mxu0 %v2768_v41 }
0x10b4   :  { %1495 = vmatpush1.msra.mxu0 %v2767_v42 }
0x10b5   :  { %1496 = vmatprep.subr.mxu0 %v2766_v43 }
0x10b6   :  { %1497 = vmatpush1.msra.mxu0 %v2765_v44 }
0x10b7   :  { %3123 = vmatprep.subr.mxu0 %v3376_v46 }
0x1135   :  { %v1390_v22 = vpop.xlane.xlu0 %1389 }
0x1136   :  { %v1394_v23 = vmul.f32 0.015625, %v1390_v22 }
0x1138   :  { %v1396_v24 = vsub.f32 %v1384_v20, %v1394_v23 }
0x113a   :  { %v1398_v18 = vmul.f32 %v1396_v24, %v1396_v24 }
0x113c   :  { %v1400_v25 = vsel %vm190_vm2, %v1398_v18, 0.0 }
0x113d   :  { %1401 = vadd.xlane.f32.xlu0 %v1400_v25 }
0x1141   :  { %1392 = vadd.xlane.f32.xlu0 %v1391_v28 }
0x11c6   :  { %v1402_v45 = vpop.xlane.xlu0 %1401 }
0x11c7   :  { %v1406_v47 = vmul.f32 0.015625, %v1402_v45 }
0x11c9   :  { %v1408_v48 = vadd.f32 1e-05, %v1406_v47 }
0x11ca   :  { %v1393_v49 = vpop.xlane.xlu0 %1392 }
0x11cb   :  { %3295 = vrsqrt.f32 %v1408_v48  ;;  %v1395_v50 = vmul.f32 0.015625, %v1393_v49 }
0x11cd   :  { %v1397_v51 = vsub.f32 %v1385_v26, %v1395_v50 }
0x11cf   :  { %v1399_v52 = vmul.f32 %v1397_v51, %v1397_v51 }
0x11d1   :  { %v1403_v53 = vsel %vm190_vm2, %v1399_v52, 0.0 }
0x11d2   :  { %1404 = vadd.xlane.f32.xlu0 %v1403_v53 }
0x11d8   :  { %v3296_v54 = vpop.eup %3295 }
0x11d9   :  { %v1412_v56 = vmul.f32 %v3296_v54, %v1396_v24 }
0x11db   :  { %v1420_v58 = vmul.f32 %v2763_v55, %v1412_v56 }
0x11dd   :  { %v3880_v59 = vadd.f32 %v2764_v57, %v1420_v58 }
0x11df   :  { %2782 = vmatmul.mubr.msk.f32.vlgmr.msra.gmra.mxu0 %vm190_vm2, %v3880_v59 }
0x11e0   :  { %1536 = vmatprep.mubr.f32.mxu0 %v3376_v46 }
0x125b   :  { %v1405_v60 = vpop.xlane.xlu0 %1404 }
0x125c   :  { %v1407_v61 = vmul.f32 0.015625, %v1405_v60 }
0x125e   :  { %v1409_v62 = vadd.f32 1e-05, %v1407_v61 }
0x1260   :  { %3297 = vrsqrt.f32 %v1409_v62 }
0x126d   :  { %v3298_v63 = vpop.eup %3297 }
0x126e   :  { %v1413_v1 = vmul.f32 %v3298_v63, %v1397_v51 }
0x1270   :  { %v1421_v2 = vmul.f32 %v2763_v55, %v1413_v1 }
0x1272   :  { %v3885_v3 = vadd.f32 %v2764_v57, %v1421_v2 }
0x1274   :  { %2783 = vmatmul.mubr.msk.f32.gmra.mxu0 %vm190_vm2, %v3885_v3 }
0x1275   :  { %3125 = vmatprep.mubr.msk.f32.mxu0 %vm3377_vm3, %v3376_v46 }
0x129f   :  { %v1532_v7 = vpop.f32.mrf.mxu0 }
0x12a0   :  { %v1533_v9 = vadd.f32 %v1532_v7, %v1453_v5 }
0x12a1   :  { %v1534_v6 = vpop.f32.mrf.mxu0 }
0x12a2   :  { %1544 = vrot.lane.b32.xlu0 %v1533_v9, %s3378_s26  ;;  %v3903_v12 = vadd.f32 %v1534_v6, %v3898_v8 }
0x12a6   :  { %1706 = vrot.lane.b32.xlu0 %v1533_v9, %s3380_s0 }
0x1314   :  { %v1545_v10 = vpop.permute.xlu0 %1544 }
0x1315   :  { %3124 = vmatpush3.xpose.msk.msra.mxu0 %vm351_vm4, %v1545_v10 }
0x1316   :  { %3128 = vmatprep.subr.mxu0 %v3376_v46 }
0x1318   :  { %3126 = vmatmul.mubr.msk.f32.vlgmr.msra.gmra.mxu0 %vm351_vm4, %v1533_v9  ;;  %v1707_v29 = vpop.permute.xlu0 %1706 }
0x1319   :  { %3129 = vmatpush3.msra.mxu0 %v3903_v12  ;;  %3130 = vmatprep.mubr.msk.f32.mxu0 %vm3377_vm3, %v3376_v46 }
0x131a   :  { %3133 = vmatprep.subr.mxu0 %v3376_v46 }
0x1334   :  { %v1538_v11 = vpop.f32.mrf.mxu0 }
0x1335   :  { %v1539_v19 = vadd.f32 %v1538_v11, %v1453_v5 }
0x1336   :  { %v3912_v13 = vpop.f32.mrf.mxu0 }
0x1337   :  { %1880 = vrot.lane.b32.xlu0 %v1539_v19, %s3378_s26  ;;  %v1541_v4 = vadd.f32 %v3912_v13, %v3898_v8 }
0x133b   :  { %2042 = vrot.lane.b32.xlu0 %v1539_v19, %s3380_s0 }
0x13a9   :  { %v1881_v31 = vpop.permute.xlu0 %1880 }
0x13ad   :  { %v2043_v33 = vpop.permute.xlu0 %2042 }
0x13d8   :  { %v1616_v14 = vpop.f32.mrf.mxu0 }
0x13d9   :  { %v1620_v15 = vmul.f32 0.17677669, %v1616_v14 }
0x13da   :  { %v3127_v16 = vpop.f32.mrf.mxu0 }
0x13db   :  { %v1621_v17 = vadd.f32 %v1620_v15, %v3651_v27  ;;  %v2803_v15 = vld [vmem:[%s4128_s8 + $0x78] sm:$0xff]  ;;  %v2802_v16 = vld [vmem:[%s4128_s8 + $0x70] sm:$0xff] }
0x13dd   :  { %v1622_v20 = vsel %vm432_vm5, %v1621_v17, -inf }
0x13de   :  { %1623 = vmax.xlane.f32.xlu1 %v1622_v20  ;;  %v2800_v20 = vld [vmem:[%s4128_s8 + $0x60] sm:$0xff] }
0x1467   :  { %v1624_v21 = vpop.xlane.xlu1 %1623 }
0x1468   :  { %v1625_v22 = vsub.f32 %v1621_v17, %v1624_v21  ;;  %v2801_v17 = vld [vmem:[%s4128_s8 + $0x68] sm:$0xff]  ;;  %v2799_v21 = vld [vmem:[%s4128_s8 + $0x58] sm:$0xff] }
0x146a   :  { %v1626_v23 = vmul.f32 1.442695, %v1625_v22  ;;  %v2798_v22 = vld [vmem:[%s4128_s8 + $0x50] sm:$0xff] }
0x146c   :  { %3299 = vpow2.f32 %v1626_v23  ;;  %v2797_v23 = vld [vmem:[%s4128_s8 + $0x48] sm:$0xff] }
0x1479   :  { %v3300_v24 = vpop.eup %3299 }
0x147a   :  { %v1628_v18 = vsel %vm432_vm5, %v3300_v24, 0.0 }
0x147b   :  { %1629 = vadd.xlane.f32.xlu1 %v1628_v18 }
0x148c   :  { %1708 = vrot.lane.b32.xlu1 %v1533_v9, %s3379_s29 }
0x1490   :  { %2044 = vrot.lane.b32.xlu1 %v1539_v19, %s3379_s29 }
0x1504   :  { %v1630_v25 = vpop.xlane.xlu1 %1629 }
0x1505   :  { %3301 = vrcp.f32 %v1630_v25 }
0x1508   :  { %v1709_v30 = vpop.permute.xlu1 %1708 }
0x150c   :  { %v2045_v32 = vpop.permute.xlu1 %2044 }
0x1512   :  { %v3302_v26 = vpop.eup %3301 }
0x1513   :  { %v1632_v28 = vmul.f32 %v3302_v26, %v3300_v24  ;;  %v2796_v24 = vld [vmem:[%s4128_s8 + $0x40] sm:$0xff] }
0x1515   :  { %3131 = vmatmul.mubr.msk.f32.vlgmr.msra.gmra.mxu0 %vm432_vm5, %v1632_v28 }
0x1516   :  { %3134 = vmatpush3.xpose.msk.msra.mxu0 %vm351_vm4, %v1709_v30  ;;  %3135 = vmatprep.mubr.msk.f32.mxu0 %vm3377_vm3, %v3376_v46 }
0x1517   :  { %3143 = vmatprep.subr.mxu0 %v3376_v46 }
0x1519   :  { %3136 = vmatmul.mubr.msk.f32.vlgmr.msra.gmra.mxu0 %vm351_vm4, %v1707_v29 }
0x151a   :  { %3144 = vmatpush3.xpose.msk.msra.mxu0 %vm351_vm4, %v1881_v31  ;;  %3145 = vmatprep.mubr.msk.f32.mxu0 %vm3377_vm3, %v3376_v46 }
0x151b   :  { %3153 = vmatprep.subr.mxu0 %v3376_v46 }
0x151d   :  { %3146 = vmatmul.mubr.msk.f32.vlgmr.msra.gmra.mxu0 %vm351_vm4, %v1539_v19 }
0x151e   :  { %3154 = vmatpush3.xpose.msk.msra.mxu0 %vm351_vm4, %v2045_v32  ;;  %3155 = vmatprep.mubr.msk.f32.mxu0 %vm3377_vm3, %v3376_v46 }
0x151f   :  { %3163 = vmatprep.subr.mxu0 %v2803_v15 }
0x1521   :  { %3156 = vmatmul.mubr.msk.f32.vlgmr.msra.gmra.mxu0 %vm351_vm4, %v2043_v33 }
0x1522   :  { %3164 = vmatpush3.msra.mxu0 %v2803_v15  ;;  %v2829_v15 = vld [vmem:[%s4134_s14 + $0xe8] sm:$0xff] }
0x1523   :  { %3165 = vmatprep.subr.mxu0 %v2802_v16 }
0x1524   :  { %3166 = vmatpush3.msra.mxu0 %v2802_v16  ;;  %v2828_v16 = vld [vmem:[%s4134_s14 + $0xe0] sm:$0xff] }
0x1525   :  { %3167 = vmatprep.subr.mxu0 %v2801_v17 }
0x1526   :  { %3168 = vmatpush3.msra.mxu0 %v2801_v17  ;;  %v2827_v17 = vld [vmem:[%s4134_s14 + $0xd8] sm:$0xff] }
0x1527   :  { %3169 = vmatprep.subr.mxu0 %v2800_v20 }
0x1528   :  { %3170 = vmatpush3.msra.mxu0 %v2800_v20  ;;  %v2826_v20 = vld [vmem:[%s4134_s14 + $0xd0] sm:$0xff] }
0x1529   :  { %3171 = vmatprep.subr.mxu0 %v2799_v21 }
0x152a   :  { %3172 = vmatpush3.msra.mxu0 %v2799_v21  ;;  %v2825_v21 = vld [vmem:[%s4134_s14 + $0xc8] sm:$0xff] }
0x152b   :  { %3173 = vmatprep.subr.mxu0 %v2798_v22 }
0x152c   :  { %3174 = vmatpush3.msra.mxu0 %v2798_v22  ;;  %v2824_v22 = vld [vmem:[%s4134_s14 + $0xc0] sm:$0xff] }
0x152d   :  { %3175 = vmatprep.subr.mxu0 %v2797_v23 }
0x152e   :  { %3176 = vmatpush3.msra.mxu0 %v2797_v23  ;;  %v2823_v23 = vld [vmem:[%s4134_s14 + $0xb8] sm:$0xff] }
0x152f   :  { %3177 = vmatprep.subr.mxu0 %v2796_v24 }
0x1530   :  { %3178 = vmatpush3.msra.mxu0 %v2796_v24  ;;  %v2822_v24 = vld [vmem:[%s4134_s14 + $0xb0] sm:$0xff] }
0x15d5   :  { %v3934_v34 = vpop.f32.mrf.mxu0 }
0x15d7   :  { %v3132_v35 = vpop.f32.mrf.mxu0 }
0x15d9   :  { %v1780_v36 = vpop.f32.mrf.mxu0 }
0x15da   :  { %v1784_v37 = vmul.f32 0.17677669, %v1780_v36  ;;  %v2805_v36 = vld [vmem:[%s4129_s9 + $0x1] ss:$0 sm:$0xff] }
0x15db   :  { %v3137_v38 = vpop.f32.mrf.mxu0 }
0x15dc   :  { %v1785_v39 = vadd.f32 %v1784_v37, %v3651_v27 }
0x15dd   :  { %v1952_v40 = vpop.f32.mrf.mxu0 }
0x15de   :  { %v1956_v41 = vmul.f32 0.17677669, %v1952_v40  ;;  %v1786_v42 = vsel %vm432_vm5, %v1785_v39, -inf }
0x15df   :  { %1787 = vmax.xlane.f32.xlu1 %v1786_v42  ;;  %v3147_v43 = vpop.f32.mrf.mxu0 }
0x15e0   :  { %v1957_v44 = vadd.f32 %v1956_v41, %v3688_v0 }
0x15e1   :  { %v2116_v45 = vpop.f32.mrf.mxu0 }
0x15e2   :  { %v2120_v47 = vmul.f32 0.17677669, %v2116_v45  ;;  %v1958_v48 = vsel %vm432_vm5, %v1957_v44, -inf }
0x15e3   :  { %1959 = vmax.xlane.f32.xlu0 %v1958_v48  ;;  %v3157_v49 = vpop.f32.mrf.mxu0 }
0x15e4   :  { %v2121_v50 = vadd.f32 %v2120_v47, %v3688_v0 }
0x15e6   :  { %v2122_v51 = vsel %vm432_vm5, %v2121_v50, -inf }
0x15e7   :  { %2123 = vmax.xlane.f32.xlu0 %v2122_v51 }
0x1668   :  { %v1788_v27 = vpop.xlane.xlu1 %1787 }
0x1669   :  { %v1789_v52 = vsub.f32 %v1785_v39, %v1788_v27 }
0x166b   :  { %v1790_v53 = vmul.f32 1.442695, %v1789_v52 }
0x166c   :  { %v1960_v54 = vpop.xlane.xlu0 %1959 }
0x166d   :  { %3303 = vpow2.f32 %v1790_v53  ;;  %v1961_v55 = vsub.f32 %v1957_v44, %v1960_v54  ;;  %v2369_v53 = vld [vmem:[#allocation2 + $0x78] sm:$0xff]  ;;  %v2367_v54 = vld [vmem:[#allocation2 + $0x68] sm:$0xff] }
0x166f   :  { %v1962_v56 = vmul.f32 1.442695, %v1961_v55  ;;  %v2366_v55 = vld [vmem:[#allocation2 + $0x60] sm:$0xff] }
0x1670   :  { %v2124_v57 = vpop.xlane.xlu0 %2123 }
0x1671   :  { %3305 = vpow2.f32 %v1962_v56  ;;  %v2125_v58 = vsub.f32 %v2121_v50, %v2124_v57  ;;  %v2365_v56 = vld [vmem:[#allocation2 + $0x58] sm:$0xff]  ;;  %v2364_v57 = vld [vmem:[#allocation2 + $0x50] sm:$0xff] }
0x1673   :  { %v2126_v60 = vmul.f32 1.442695, %v2125_v58  ;;  %v2363_v58 = vld [vmem:[#allocation2 + $0x48] sm:$0xff] }
0x1675   :  { %3307 = vpow2.f32 %v2126_v60  ;;  %v2362_v60 = vld [vmem:[#allocation2 + $0x40] sm:$0xff] }
0x167a   :  { %v3304_v61 = vpop.eup %3303 }
0x167b   :  { %v1792_v62 = vsel %vm432_vm5, %v3304_v61, 0.0 }
0x167c   :  { %1793 = vadd.xlane.f32.xlu1 %v1792_v62 }
0x167e   :  { %v3306_v0 = vpop.eup %3305 }
0x167f   :  { %v1964_v63 = vsel %vm432_vm5, %v3306_v0, 0.0 }
0x1680   :  { %1965 = vadd.xlane.f32.xlu0 %v1964_v63 }
0x1682   :  { %v3308_v1 = vpop.eup %3307 }
0x1683   :  { %v2128_v2 = vsel %vm432_vm5, %v3308_v1, 0.0 }
0x1684   :  { %2129 = vadd.xlane.f32.xlu1 %v2128_v2 }
0x1695   :  { %2134 = vrot.lane.b32.xlu1 %v1541_v4, %s3380_s0 }
0x1696   :  { %1798 = vrot.lane.b32.xlu0 %v3903_v12, %s3380_s0 }
0x1705   :  { %v1794_v5 = vpop.xlane.xlu1 %1793 }
0x1706   :  { %3309 = vrcp.f32 %v1794_v5  ;;  %v2810_v5 = vld [vmem:[%s4130_s10 + $0x1] ss:$0 sm:$0xff] }
0x1709   :  { %v1966_v7 = vpop.xlane.xlu0 %1965 }
0x170a   :  { %3311 = vrcp.f32 %v1966_v7 }
0x170d   :  { %v2130_v9 = vpop.xlane.xlu1 %2129  ;;  %v1799_v6 = vpop.permute.xlu0 %1798 }
0x170e   :  { %3313 = vrcp.f32 %v2130_v9  ;;  %3139 = vmatpush3.msra.mxu1 %v1799_v6 }
0x170f   :  { %3148 = vmatprep.subr.mxu1 %v3376_v46 }
0x1711   :  { %v2135_v19 = vpop.permute.xlu1 %2134 }
0x1713   :  { %v3310_v10 = vpop.eup %3309 }
0x1714   :  { %v1796_v11 = vmul.f32 %v3310_v10, %v3304_v61 }
0x1716   :  { %3141 = vmatmul.mubr.msk.f32.vlgmr.msra.gmra.mxu1 %vm432_vm5, %v1796_v11  ;;  %v2811_v11 = vld [vmem:[%s4131_s11 + $0x1] ss:$0 sm:$0xff] }
0x1717   :  { %v3312_v8 = vpop.eup %3311  ;;  %3149 = vmatpush3.msra.mxu1 %v1541_v4  ;;  %3150 = vmatprep.mubr.msk.f32.mxu1 %vm3377_vm3, %v3376_v46 }
0x1718   :  { %3158 = vmatprep.subr.mxu1 %v3376_v46  ;;  %v1968_v12 = vmul.f32 %v3312_v8, %v3306_v0 }
0x171a   :  { %3151 = vmatmul.mubr.msk.f32.vlgmr.msra.gmra.mxu1 %vm432_vm5, %v1968_v12 }
0x171b   :  { %v3314_v13 = vpop.eup %3313  ;;  %3159 = vmatpush3.msra.mxu1 %v2135_v19  ;;  %3160 = vmatprep.mubr.msk.f32.mxu1 %vm3377_vm3, %v3376_v46 }
0x171c   :  { %v2132_v14 = vmul.f32 %v3314_v13, %v3308_v1  ;;  %3182 = vmatprep.subr.mxu1 %v2369_v53  ;;  %v2831_v13 = vld [vmem:[%s4134_s14 + $0xf8] sm:$0xff] }
0x171d   :  { %3201 = vmatprep.subr.mxu0 %v2831_v13 }
0x171e   :  { %3161 = vmatmul.mubr.msk.f32.vlgmr.msra.gmra.mxu1 %vm432_vm5, %v2132_v14  ;;  %v2830_v14 = vld [vmem:[%s4134_s14 + $0xf0] sm:$0xff] }
0x171f   :  { %3183 = vmatpush3.msra.mxu1 %v2369_v53  ;;  %v2833_v53 = vld [vmem:[%s4135_s15 + $0x1] ss:$0 sm:$0xff] }
0x17d6   :  { %v1870_v18 = vpop.f32.mrf.mxu1 }
0x17d7   :  { %1875 = vrot.lane.b32.xlu1 %v1870_v18, %s3379_s29  ;;  %v2821_v18 = vld [vmem:[%s4134_s14 + $0xa8] sm:$0xff] }
0x17d8   :  { %v3142_v25 = vpop.f32.mrf.mxu1 }
0x17d9   :  { %v2820_v25 = vld [vmem:[%s4134_s14 + $0xa0] sm:$0xff] }
0x17da   :  { %v2038_v26 = vpop.f32.mrf.mxu1 }
0x17dc   :  { %v3152_v28 = vpop.f32.mrf.mxu1 }
0x17dd   :  { %v2818_v28 = vld [vmem:[%s4134_s14 + $0x90] sm:$0xff] }
0x17de   :  { %v2206_v29 = vpop.f32.mrf.mxu1 }
0x17df   :  { %2211 = vrot.lane.b32.xlu0 %v2206_v29, %s3379_s29  ;;  %v2817_v29 = vld [vmem:[%s4134_s14 + $0x88] sm:$0xff] }
0x17e0   :  { %v3162_v30 = vpop.f32.mrf.mxu1 }
0x17e1   :  { %v2816_v30 = vld [vmem:[%s4134_s14 + $0x80] sm:$0xff] }
0x1849   :  { %v1876_v31 = vpop.permute.xlu1 %1875 }
0x184a   :  { %v1878_v32 = vsel %vm351_vm4, %v3934_v34, %v1876_v31  ;;  %v2813_v31 = vld [vmem:[%s4133_s13 + $0x1] ss:$0 sm:$0xff] }
0x184b   :  { %3179 = vmatprep.mubr.msk.f32.mxu0 %vm190_vm2, %v1878_v32 }
0x1851   :  { %v2212_v33 = vpop.permute.xlu0 %2211 }
0x1852   :  { %v2214_v35 = vsel %vm351_vm4, %v2038_v26, %v2212_v33  ;;  %v2819_v26 = vld [vmem:[%s4134_s14 + $0x98] sm:$0xff] }
0x1853   :  { %3180 = vmatmul.mubr.msk.f32.vlgmr.msra.gmra.mxu0 %vm190_vm2, %v2214_v35 }
0x1854   :  { %3202 = vmatpush3.msra.mxu0 %v2831_v13  ;;  %v2632_v13 = vld [vmem:[%s4138_s18 + $0x10] sm:$0xff] }
0x1855   :  { %3203 = vmatprep.subr.mxu0 %v2830_v14 }
0x1856   :  { %3204 = vmatpush3.msra.mxu0 %v2830_v14  ;;  %v2631_v14 = vld [vmem:[%s4138_s18 + $0x8] sm:$0xff] }
0x1857   :  { %3205 = vmatprep.subr.mxu0 %v2829_v15 }
0x1858   :  { %3206 = vmatpush3.msra.mxu0 %v2829_v15  ;;  %v2630_v15 = vld [vmem:[%s4138_s18] sm:$0xff] }
0x1859   :  { %3207 = vmatprep.subr.mxu0 %v2828_v16 }
0x185a   :  { %3208 = vmatpush3.msra.mxu0 %v2828_v16 }
0x185b   :  { %3209 = vmatprep.subr.mxu0 %v2827_v17 }
0x185c   :  { %3210 = vmatpush3.msra.mxu0 %v2827_v17 }
0x185d   :  { %3211 = vmatprep.subr.mxu0 %v2826_v20 }
0x185e   :  { %3212 = vmatpush3.msra.mxu0 %v2826_v20 }
0x185f   :  { %3213 = vmatprep.subr.mxu0 %v2825_v21 }
0x1860   :  { %3214 = vmatpush3.msra.mxu0 %v2825_v21 }
0x1861   :  { %3215 = vmatprep.subr.mxu0 %v2824_v22 }
0x1862   :  { %3216 = vmatpush3.msra.mxu0 %v2824_v22 }
0x1863   :  { %3217 = vmatprep.subr.mxu0 %v2823_v23 }
0x1864   :  { %3218 = vmatpush3.msra.mxu0 %v2823_v23 }
0x1865   :  { %3219 = vmatprep.subr.mxu0 %v2822_v24 }
0x1866   :  { %3220 = vmatpush3.msra.mxu0 %v2822_v24 }
0x1867   :  { %3221 = vmatprep.subr.mxu0 %v2821_v18 }
0x1868   :  { %3222 = vmatpush3.msra.mxu0 %v2821_v18  ;;  %v2836_v18 = vld [vmem:[%s4136_s16 + $0x1] ss:$0 sm:$0xff]  ;;  %s3381_s16 = smov [#allocation5]  }
0x1869   :  { %3223 = vmatprep.subr.mxu0 %v2820_v25  ;;  %s2725_s1 = sshll.u32 %s3381_s16, 4  ;;  %s2726_s1 = int_to_ptr.vmem [resolvable:$true] %s2725_s1 }
0x186a   :  { %3224 = vmatpush3.msra.mxu0 %v2820_v25  ;;  %p3352_p6 = scmp.lt.s32.totalorder %s2726_s1, %s2726_s1 }
0x186b   :  { %3225 = vmatprep.subr.mxu0 %v2819_v26 }
0x186c   :  { %3226 = vmatpush3.msra.mxu0 %v2819_v26 }
0x186d   :  { %3227 = vmatprep.subr.mxu0 %v2818_v28 }
0x186e   :  { %3228 = vmatpush3.msra.mxu0 %v2818_v28 }
0x186f   :  { %3229 = vmatprep.subr.mxu0 %v2817_v29 }
0x1870   :  { %3230 = vmatpush3.msra.mxu0 %v2817_v29 }
0x1871   :  { %3231 = vmatprep.subr.mxu0 %v2816_v30 }
0x1872   :  { %3232 = vmatpush3.msra.mxu0 %v2816_v30 }
0x1913   :  { %v3181_v37 = vpop.f32.mrf.mxu0 }
0x1914   :  { %v2310_v38 = vadd.f32 %v3181_v37, %v2805_v36 }
0x1915   :  { %v2304_v39 = vpop.f32.mrf.mxu0 }
0x1916   :  { %v2305_v40 = vadd.f32 %v2805_v36, %v2304_v39  ;;  %v2314_v41 = vadd.f32 %v2310_v38, %v3885_v3 }
0x1918   :  { %v2322_v42 = vsel %vm190_vm2, %v2314_v41, 0.0  ;;  %v2313_v34 = vadd.f32 %v2305_v40, %v3880_v59  ;;  %v2368_v59 = vld [vmem:[#allocation2 + $0x70] sm:$0xff] }
0x1919   :  { %2323 = vadd.xlane.f32.xlu0 %v2322_v42  ;;  %3184 = vmatprep.subr.mxu1 %v2368_v59 }
0x191a   :  { %v2319_v43 = vsel %vm190_vm2, %v2313_v34, 0.0  ;;  %3185 = vmatpush3.msra.mxu1 %v2368_v59 }
0x191b   :  { %2320 = vadd.xlane.f32.xlu1 %v2319_v43  ;;  %3186 = vmatprep.subr.mxu1 %v2367_v54 }
0x191c   :  { %3187 = vmatpush3.msra.mxu1 %v2367_v54 }
0x191d   :  { %3188 = vmatprep.subr.mxu1 %v2366_v55 }
0x191e   :  { %3189 = vmatpush3.msra.mxu1 %v2366_v55 }
0x191f   :  { %3190 = vmatprep.subr.mxu1 %v2365_v56 }
0x1920   :  { %3191 = vmatpush3.msra.mxu1 %v2365_v56 }
0x1921   :  { %3192 = vmatprep.subr.mxu1 %v2364_v57 }
0x1922   :  { %3193 = vmatpush3.msra.mxu1 %v2364_v57 }
0x1923   :  { %3194 = vmatprep.subr.mxu1 %v2363_v58 }
0x1924   :  { %3195 = vmatpush3.msra.mxu1 %v2363_v58 }
0x1925   :  { %3196 = vmatprep.subr.mxu1 %v2362_v60 }
0x1926   :  { %3197 = vmatpush3.msra.mxu1 %v2362_v60 }
0x1927   :  { %3236 = vmatprep.subr.mxu1 %v3376_v46 }
0x19a2   :  { %v2324_v44 = vpop.xlane.xlu0 %2323 }
0x19a3   :  { %v2326_v45 = vmul.f32 0.015625, %v2324_v44 }
0x19a4   :  { %v2321_v47 = vpop.xlane.xlu1 %2320 }
0x19a5   :  { %v2328_v48 = vsub.f32 %v2314_v41, %v2326_v45  ;;  %v2325_v49 = vmul.f32 0.015625, %v2321_v47 }
0x19a7   :  { %v2327_v50 = vsub.f32 %v2313_v34, %v2325_v49  ;;  %v2330_v51 = vmul.f32 %v2328_v48, %v2328_v48 }
0x19a9   :  { %v2334_v27 = vsel %vm190_vm2, %v2330_v51, 0.0  ;;  %v2329_v52 = vmul.f32 %v2327_v50, %v2327_v50 }
0x19aa   :  { %2335 = vadd.xlane.f32.xlu1 %v2334_v27 }
0x19ab   :  { %v2331_v3 = vsel %vm190_vm2, %v2329_v52, 0.0 }
0x19ac   :  { %2332 = vadd.xlane.f32.xlu0 %v2331_v3 }
0x1a33   :  { %v2336_v61 = vpop.xlane.xlu1 %2335 }
0x1a34   :  { %v2338_v62 = vmul.f32 0.015625, %v2336_v61 }
0x1a35   :  { %v2333_v0 = vpop.xlane.xlu0 %2332 }
0x1a36   :  { %v2340_v63 = vadd.f32 1e-05, %v2338_v62  ;;  %v2337_v1 = vmul.f32 0.015625, %v2333_v0 }
0x1a38   :  { %3315 = vrsqrt.f32 %v2340_v63  ;;  %v2339_v2 = vadd.f32 1e-05, %v2337_v1 }
0x1a3a   :  { %3317 = vrsqrt.f32 %v2339_v2 }
0x1a45   :  { %v3316_v4 = vpop.eup %3315 }
0x1a46   :  { %v2344_v7 = vmul.f32 %v3316_v4, %v2328_v48 }
0x1a47   :  { %v3318_v9 = vpop.eup %3317 }
0x1a48   :  { %v2343_v6 = vmul.f32 %v3318_v9, %v2327_v50  ;;  %v2352_v10 = vmul.f32 %v2810_v5, %v2344_v7 }
0x1a4a   :  { %v2351_v8 = vmul.f32 %v2810_v5, %v2343_v6  ;;  %v4008_v19 = vadd.f32 %v2811_v11, %v2352_v10  ;;  %v2637_v10 = vld [vmem:[%s4138_s18 + $0x38] sm:$0xff] }
0x1a4c   :  { %v4006_v12 = vadd.f32 %v2811_v11, %v2351_v8  ;;  %v2636_v11 = vld [vmem:[%s4138_s18 + $0x30] sm:$0xff]  ;;  %v2635_v8 = vld [vmem:[%s4138_s18 + $0x28] sm:$0xff] }
0x1a4e   :  { %3198 = vmatprep.mubr.msk.f32.mxu1 %vm190_vm2, %v4006_v12 }
0x1a4f   :  { %3199 = vmatmul.mubr.msk.f32.vlgmr.msra.gmra.mxu1 %vm190_vm2, %v4008_v19 }
0x1a50   :  { %3252 = vmatprep.mubr.msk.f32.mxu1 %vm3377_vm3, %v3376_v46  ;;  %3237 = vmatpush3.msra.mxu1 %v2637_v10 }
0x1a51   :  { %3238 = vmatprep.subr.mxu1 %v3376_v46 }
0x1a52   :  { %3239 = vmatpush3.msra.mxu1 %v2636_v11 }
0x1a53   :  { %3240 = vmatprep.subr.mxu1 %v3376_v46 }
0x1a54   :  { %3241 = vmatpush3.msra.mxu1 %v2635_v8 }
0x1a55   :  { %3242 = vmatprep.subr.mxu1 %v3376_v46 }
0x1b0f   :  { %v3200_v32 = vpop.f32.mrf.mxu1 }
0x1b10   :  { %v2456_v33 = vadd.f32 %v3200_v32, %v2813_v31 }
0x1b11   :  { %v2450_v35 = vpop.f32.mrf.mxu1 }
0x1b12   :  { %v2462_v36 = vmul.f32 0.044715, %v2456_v33  ;;  %v2451_v37 = vadd.f32 %v2813_v31, %v2450_v35  ;;  %v2460_v27 = vmul.f32 0.5, %v2456_v33 }
0x1b14   :  { %v2464_v38 = vmul.f32 %v2462_v36, %v2456_v33  ;;  %v2461_v39 = vmul.f32 0.044715, %v2451_v37  ;;  %v2459_v50 = vmul.f32 0.5, %v2451_v37  ;;  %v2838_v36 = vld [vmem:[%s4139_s19] ss:$0 sm:$0xff] }
0x1b16   :  { %v2466_v40 = vmul.f32 %v2464_v38, %v2456_v33  ;;  %v2463_v41 = vmul.f32 %v2461_v39, %v2451_v37 }
0x1b18   :  { %v2468_v42 = vadd.f32 %v2466_v40, %v2456_v33  ;;  %v2465_v34 = vmul.f32 %v2463_v41, %v2451_v37 }
0x1b1a   :  { %v2467_v43 = vadd.f32 %v2465_v34, %v2451_v37  ;;  %v2470_v44 = vmul.f32 0.7978846, %v2468_v42 }
0x1b1c   :  { %v2469_v45 = vmul.f32 0.7978846, %v2467_v43  ;;  %3319 = vtanh.f32 %v2470_v44 }
0x1b1e   :  { %3321 = vtanh.f32 %v2469_v45 }
0x1b29   :  { %v3320_v47 = vpop.eup %3319 }
0x1b2a   :  { %v2474_v49 = vadd.f32 1.0, %v3320_v47 }
0x1b2b   :  { %v3322_v48 = vpop.eup %3321 }
0x1b2c   :  { %v2473_v51 = vadd.f32 1.0, %v3322_v48  ;;  %v2476_v3 = vmul.f32 %v2474_v49, %v2460_v27 }
0x1b2e   :  { %v2475_v52 = vmul.f32 %v2473_v51, %v2459_v50 }
0x1b30   :  { %3233 = vmatprep.mubr.f32.mxu0 %v2475_v52 }
0x1b31   :  { %3234 = vmatmul.mubr.f32.vlgmr.msra.gmra.mxu0 %v2476_v3 }
0x1bf1   :  { %v3235_v59 = vpop.f32.mrf.mxu0 }
0x1bf2   :  { %v2574_v54 = vadd.f32 %v3235_v59, %v2833_v53 }
0x1bf3   :  { %v2568_v55 = vpop.f32.mrf.mxu0 }
0x1bf4   :  { %v2569_v56 = vadd.f32 %v2833_v53, %v2568_v55  ;;  %v2578_v57 = vadd.f32 %v2574_v54, %v4008_v19  ;;  %v2633_v19 = vld [vmem:[%s4138_s18 + $0x18] sm:$0xff] }
0x1bf6   :  { %v2586_v58 = vsel %vm190_vm2, %v2578_v57, 0.0  ;;  %v2577_v60 = vadd.f32 %v2569_v56, %v4006_v12  ;;  %v2634_v12 = vld [vmem:[%s4138_s18 + $0x20] sm:$0xff] }
0x1bf7   :  { %2587 = vadd.xlane.f32.xlu0 %v2586_v58  ;;  %3243 = vmatpush3.msra.mxu1 %v2634_v12 }
0x1bf8   :  { %v2583_v61 = vsel %vm190_vm2, %v2577_v60, 0.0  ;;  %3244 = vmatprep.subr.mxu1 %v3376_v46 }
0x1bf9   :  { %2584 = vadd.xlane.f32.xlu1 %v2583_v61  ;;  %3245 = vmatpush3.msra.mxu1 %v2633_v19 }
0x1bfa   :  { %3246 = vmatprep.subr.mxu1 %v3376_v46 }
0x1bfb   :  { %3247 = vmatpush3.msra.mxu1 %v2632_v13 }
0x1bfc   :  { %3248 = vmatprep.subr.mxu1 %v3376_v46 }
0x1bfd   :  { %3249 = vmatpush3.msra.mxu1 %v2631_v14 }
0x1bfe   :  { %3250 = vmatprep.subr.mxu1 %v3376_v46  ;;  %v2837_v46 = vld [vmem:[%s4137_s17 + $0x1] ss:$0 sm:$0xff]  ;;  %s3347_s17 = scalar_lea.vmem %s2726_s1, 32 }
0x1bff   :  { %3251 = vmatpush3.msra.mxu1 %v2630_v15  ;;  %p3348_p5 = scmp.ne.s32.totalorder %s2726_s1, %s3347_s17  ;;  %p3353_p7 = scmp.lt.s32.totalorder %s3347_s17, %s3347_s17 }
0x1c01   :  { %p3354_p8 = por %p3353_p7, %p3352_p6 }
0x1c03   :  { %p3355_p9 = pnand %p3354_p8, %p3348_p5 }
0x1c80   :  { %v2588_v62 = vpop.xlane.xlu0 %2587 }
0x1c81   :  { %v2590_v0 = vmul.f32 0.015625, %v2588_v62 }
0x1c82   :  { %v2585_v63 = vpop.xlane.xlu1 %2584 }
0x1c83   :  { %v2592_v1 = vsub.f32 %v2578_v57, %v2590_v0  ;;  %v2589_v2 = vmul.f32 0.015625, %v2585_v63 }
0x1c85   :  { %v2591_v4 = vsub.f32 %v2577_v60, %v2589_v2  ;;  %v2594_v5 = vmul.f32 %v2592_v1, %v2592_v1 }
0x1c87   :  { %v2598_v7 = vsel %vm190_vm2, %v2594_v5, 0.0  ;;  %v2593_v9 = vmul.f32 %v2591_v4, %v2591_v4 }
0x1c88   :  { %2599 = vadd.xlane.f32.xlu0 %v2598_v7 }
0x1c89   :  { %v2595_v6 = vsel %vm190_vm2, %v2593_v9, 0.0 }
0x1c8a   :  { %2596 = vadd.xlane.f32.xlu1 %v2595_v6 }
0x1d11   :  { %v2600_v16 = vpop.xlane.xlu0 %2599 }
0x1d12   :  { %v2602_v17 = vmul.f32 0.015625, %v2600_v16 }
0x1d13   :  { %v2597_v20 = vpop.xlane.xlu1 %2596 }
0x1d14   :  { %v2604_v21 = vadd.f32 1e-05, %v2602_v17  ;;  %v2601_v22 = vmul.f32 0.015625, %v2597_v20 }
0x1d16   :  { %3323 = vrsqrt.f32 %v2604_v21  ;;  %v2603_v23 = vadd.f32 1e-05, %v2601_v22 }
0x1d18   :  { %3325 = vrsqrt.f32 %v2603_v23 }
0x1d23   :  { %v3324_v24 = vpop.eup %3323 }
0x1d24   :  { %v2608_v25 = vmul.f32 %v3324_v24, %v2592_v1 }
0x1d25   :  { %v3326_v26 = vpop.eup %3325 }
0x1d26   :  { %v2607_v28 = vmul.f32 %v3326_v26, %v2591_v4  ;;  %v2616_v29 = vmul.f32 %v2836_v18, %v2608_v25 }
0x1d28   :  { %v2615_v30 = vmul.f32 %v2836_v18, %v2607_v28  ;;  %v2624_v31 = vadd.f32 %v2837_v46, %v2616_v29 }
0x1d2a   :  { %v2623_v32 = vadd.f32 %v2837_v46, %v2615_v30  ;;  %v2626_v33 = vrot.slane %v2624_v31, 7 }
0x1d2c   :  { %v2629_v35 = vsel %vm2628_vm6, %v2623_v32, %v2626_v33 }
0x1d2d   :  { %3253 = vmatmul.mubr.msk.f32.vlgmr.msra.gmra.mxu1 %vm190_vm2, %v2629_v35 }
0x1ded   :  { %v2714_v37 = vpop.f32.mrf.mxu1 }
0x1dee   :  { %v2715_v38 = vadd.f32 %v2838_v36, %v2714_v37 }
0x1def   :  { %v3254_v39 = vpop.f32.mrf.mxu1 }
0x1df0   :  { %2718 = vst [vmem:[#allocation5] sm:$0x3] %v2715_v38 }
0x1df1   :  { %3358 = shalt.err (!%p3355_p9)
}
0x1df2   :  { %2728 = dma.vmem_to_hbm [thread:$0]  %s2726_s1, 32, %s4140_s20, [#allocation4]  }
0x1df3   :  { %3369 = dma.done.wait [#allocation4], 32  }
0x1df4   :  { %3370 = vsyncadd [#allocation4], 4294967264 }
0x1df5   :  { %2732 = vsyncpa [#allocation3], 1 }
0x1df6   :  { %2733 = vsyncpa [#allocation4], 1 }

</bundles_post_ra>
